<compile_context>
chip_gen: v7x
topology: tpu7x:2x2x1
jax: 0.10.0
libtpu: 0.0.40
codegen_flags: <defaults>
</compile_context>

<pallas_src>
import jax
import jax.numpy as jnp
from jax.experimental import pallas as pl
from jax.experimental.pallas import tpu as pltpu

PATCH_SIZE = 6


def _make_constants(C, H, W, P, B_blk, dtype):
    """One-hot / key constants implementing the rearrange for a B_blk-image block."""
    Hh, Ww = H // P, W // P
    d_patch = P * P * C
    w_wide = Ww * d_patch

    # Wide column decode: s = ww*d_patch + p1*(P*C) + p2*C + c   ((p1 p2 c) order).
    s = jnp.arange(w_wide)
    r_in = s % d_patch
    ww_s = s // d_patch
    p1_s = r_in // (P * C)
    p2_s = (r_in % (P * C)) // C
    c_s = r_in % C

    # ColExpand (W, w_wide): input column w = ww*P + p2 is copied into every wide
    # column with matching (ww, p2).  One-hot per column -> exact value copies.
    col_expand = (jnp.arange(W)[:, None] == (ww_s * P + p2_s)[None, :]).astype(dtype)

    # (c, p1) match keys -- replaces the dense Mask operand.
    col_key = (c_s * P + p1_s).astype(jnp.int32)[None, :]            # (1, w_wide)

    m = jnp.arange(B_blk * C * H)
    mm = m % (C * H)                         # row within one image's (c, hh, p1) stack
    c_m = mm // H
    p1_m = mm % P                            # valid because H % P == 0
    hh_m = (mm % H) // P
    b_m = m // (C * H)
    row_key = (c_m * P + p1_m).astype(jnp.int32)[:, None]            # (rows, 1)

    # Block-diagonal row collapse (B_blk*Hh, B_blk*C*H): output row r = b*Hh + hh
    # sums the C*P rows of image b that share hh.
    r = jnp.arange(B_blk * Hh)
    row_collapse = ((r[:, None] // Hh == b_m[None, :]) &
                    (r[:, None] % Hh == hh_m[None, :])).astype(dtype)
    return col_expand, row_key, col_key, row_collapse


def _vmem_bytes_estimate(B_blk, C, H, W, P, itemsize):
    Hh, Ww = H // P, W // P
    w_wide = Ww * P * P * C
    rows = B_blk * C * H
    const = (W * w_wide + B_blk * Hh * rows) * itemsize + (rows + w_wide) * 4
    blocks = 2 * rows * W * itemsize + 2 * B_blk * Hh * w_wide * itemsize  # dbl-buffered
    interm = 2 * rows * w_wide * 4            # f32 T + select temporaries
    return const + blocks + interm


def _choose_block_batch(N, C, H, W, P, itemsize, budget=20 * 2**20):
    """Largest divisor of N giving sublane-aligned blocks under the VMEM budget,
    preferring >= 2 grid steps so both v7x TensorCores get work."""
    Hh = H // P

    def ok(b, need_two_steps):
        if N % b or b * Hh > 256:
            return False
        if need_two_steps and N // b < 2:
            return False
        if b != N and ((b * C * H) % 8 or (b * Hh) % 8):
            return False
        return _vmem_bytes_estimate(b, C, H, W, P, itemsize) <= budget

    for need_two in (True, False):
        cands = [b for b in range(1, N + 1) if ok(b, need_two)]
        if cands:
            return max(cands)
    return N


def _patches_kernel(x_ref, ce_ref, rowk_ref, colk_ref, rc_ref, o_ref):
    # 1) Lane expansion: every input column is copied into the wide columns that
    #    need it (one-hot columns -> exact copies).          (rows, w_wide)
    t = jnp.dot(x_ref[...], ce_ref[...], preferred_element_type=jnp.float32)
    # 2) (c, p1) row/column key match instead of a dense mask multiply:
    #    inf/NaN-safe and no (C*H, w_wide) operand in HBM/VMEM.
    keep = rowk_ref[...] == colk_ref[...]                   # (rows,1) == (1,w_wide)
    t = jnp.where(keep, t, 0.0).astype(ce_ref.dtype)
    # 3) Block-diagonal row collapse to the patch-row index hh of each image.
    o = jnp.dot(rc_ref[...], t, preferred_element_type=jnp.float32)
    o_ref[...] = o.astype(o_ref.dtype)


def patches(images, patch_size=PATCH_SIZE):
    """Forward pass of Patches for an NCHW batch -> (N, num_patches, P*P*C)."""
    N, C, H, W = images.shape
    P = patch_size
    assert H % P == 0 and W % P == 0, (H, W, P)
    Hh, Ww = H // P, W // P
    d_patch = P * P * C
    w_wide = Ww * d_patch
    dtype = images.dtype
    itemsize = jnp.dtype(dtype).itemsize

    B_blk = _choose_block_batch(N, C, H, W, P, itemsize)
    ce, row_key, col_key, rc = _make_constants(C, H, W, P, B_blk, dtype)
    x_flat = images.reshape(N * C * H, W)            # contiguous (free) reshape

    rows_blk = B_blk * C * H
    out_rows_blk = B_blk * Hh
    vmem_limit = int(min(max(1.25 * _vmem_bytes_estimate(B_blk, C, H, W, P, itemsize),
                             32 * 2**20), 48 * 2**20))

    # Grid-invariant constants: whole-array, single-buffered, resident in VMEM.
    resident = pl.BlockSpec(memory_space=pltpu.MemorySpace.VMEM)

    out_wide = pl.pallas_call(
        _patches_kernel,
        out_shape=jax.ShapeDtypeStruct((N * Hh, w_wide), dtype),
        grid_spec=pltpu.PrefetchScalarGridSpec(
            num_scalar_prefetch=0,
            grid=(N // B_blk,),
            in_specs=[
                pl.BlockSpec((rows_blk, W), lambda nb: (nb, 0)),  # B_blk images / step
                resident,                                         # ColExpand
                resident,                                         # row (c,p1) keys
                resident,                                         # col (c,p1) keys
                resident,                                         # block-diag RowCollapse
            ],
            out_specs=pl.BlockSpec((out_rows_blk, w_wide), lambda nb: (nb, 0)),
        ),
        compiler_params=pltpu.CompilerParams(
            dimension_semantics=("parallel",),
            vmem_limit_bytes=vmem_limit),
    )(x_flat, ce, row_key, col_key, rc)

    # Free contiguous reshape: (N*Hh, Ww*P*P*C) -> (N, Hh*Ww, P*P*C).
    return out_wide.reshape(N, Hh * Ww, d_patch)


def _patches_ref(images, patch_size=PATCH_SIZE):
    """Pure-JAX reference for 'b c (h p1) (w p2) -> b (h w) (p1 p2 c)'."""
    N, C, H, W = images.shape
    P = patch_size
    Hh, Ww = H // P, W // P
    t = images.reshape(N, C, Hh, P, Ww, P)
    t = jnp.transpose(t, (0, 2, 4, 3, 5, 1))          # (N, Hh, Ww, P, P, C)
    return t.reshape(N, Hh * Ww, P * P * C)


# TODO(synk): Patches.reconstruct_from_patch is a single-image inverse-rearrange
# helper (not part of the forward pass); it is intentionally not kernelized.

if __name__ == "__main__":
    key = jax.random.PRNGKey(0)
    # Small NCHW batch consistent with the module (H, W multiples of PATCH_SIZE).
    x = jax.random.normal(key, (8, 3, 24, 24), dtype=jnp.float32)

    y = patches(x)
    jax.block_until_ready(y)
    assert y.shape == (8, (24 // PATCH_SIZE) ** 2, PATCH_SIZE * PATCH_SIZE * 3), y.shape
    assert y.dtype == x.dtype
    ref = _patches_ref(x)
    max_err = float(jnp.max(jnp.abs(y - ref)))
    # One-hot f32 matmuls are a pure copy -> tight tolerance so a precision
    # regression (e.g. a silent bf16 downcast) is actually caught.
    assert max_err < 1e-5, max_err

    # bf16 fast path: constants follow the image dtype (single-pass MXU); the
    # rearrange remains an exact copy of the bf16 values.
    x16 = x.astype(jnp.bfloat16)
    y16 = patches(x16)
    jax.block_until_ready(y16)
    assert y16.dtype == jnp.bfloat16
    ref16 = _patches_ref(x16)
    err16 = float(jnp.max(jnp.abs(y16.astype(jnp.float32) - ref16.astype(jnp.float32))))
    assert err16 < 1e-5, err16

    print("KERNEL_OK")
</pallas_src>

<mosaic_0001>
module attributes {stable_mosaic.version = 11 : i64} {
  func.func @_patches_kernel(%arg0: i32, %arg1: memref<288x24xf32, #tpu.memory_space<vmem>>, %arg2: memref<24x432xf32, #tpu.memory_space<vmem>>, %arg3: memref<288x1xi32, #tpu.memory_space<vmem>>, %arg4: memref<1x432xi32, #tpu.memory_space<vmem>>, %arg5: memref<16x288xf32, #tpu.memory_space<vmem>>, %arg6: memref<16x432xf32, #tpu.memory_space<vmem>>) attributes {dimension_semantics = [#tpu.dimension_semantics<parallel>], iteration_bounds = array<i64: 2>, scalar_prefetch = 0 : i64, scratch_operands = 0 : i64, tpu.core_type = #tpu.core_type<tc>, window_params = [{transform_indices = @transform_0, window_bounds = array<i64: 288, 24>}, {pipeline_mode = #tpu.pipeline_mode<synchronous>, transform_indices = @transform_1, window_bounds = array<i64: 24, 432>}, {pipeline_mode = #tpu.pipeline_mode<synchronous>, transform_indices = @transform_2, window_bounds = array<i64: 288, 1>}, {pipeline_mode = #tpu.pipeline_mode<synchronous>, transform_indices = @transform_3, window_bounds = array<i64: 1, 432>}, {pipeline_mode = #tpu.pipeline_mode<synchronous>, transform_indices = @transform_4, window_bounds = array<i64: 16, 288>}, {transform_indices = @transform_5, window_bounds = array<i64: 16, 432>}]} {
    %c0 = arith.constant 0 : index
    %c0_0 = arith.constant 0 : index
    %0 = vector.load %arg1[%c0, %c0_0] : memref<288x24xf32, #tpu.memory_space<vmem>>, vector<288x24xf32>
    %c0_1 = arith.constant 0 : index
    %c0_2 = arith.constant 0 : index
    %1 = vector.load %arg2[%c0_1, %c0_2] : memref<24x432xf32, #tpu.memory_space<vmem>>, vector<24x432xf32>
    %cst = arith.constant dense<0.000000e+00> : vector<288x432xf32>
    %2 = tpu.matmul %0, %1, %cst {dimension_numbers = #tpu.dot_dimension_numbers<[1], [0], [0], [1], [0, 0, 1, 1], [], []>} : vector<288x24xf32>, vector<24x432xf32>, vector<288x432xf32> -> vector<288x432xf32>
    %c0_3 = arith.constant 0 : index
    %c0_4 = arith.constant 0 : index
    %3 = vector.load %arg3[%c0_3, %c0_4] : memref<288x1xi32, #tpu.memory_space<vmem>>, vector<288x1xi32>
    %c0_5 = arith.constant 0 : index
    %c0_6 = arith.constant 0 : index
    %4 = vector.load %arg4[%c0_5, %c0_6] : memref<1x432xi32, #tpu.memory_space<vmem>>, vector<1x432xi32>
    %5 = vector.broadcast %3 : vector<288x1xi32> to vector<288x432xi32>
    %6 = vector.broadcast %4 : vector<1x432xi32> to vector<288x432xi32>
    %7 = arith.cmpi eq, %5, %6 : vector<288x432xi32>
    %cst_7 = arith.constant 0.000000e+00 : f32
    %8 = vector.broadcast %cst_7 : f32 to vector<288x432xf32>
    %9 = arith.select %7, %2, %8 : vector<288x432xi1>, vector<288x432xf32>
    %c0_8 = arith.constant 0 : index
    %c0_9 = arith.constant 0 : index
    %10 = vector.load %arg5[%c0_8, %c0_9] : memref<16x288xf32, #tpu.memory_space<vmem>>, vector<16x288xf32>
    %cst_10 = arith.constant dense<0.000000e+00> : vector<16x432xf32>
    %11 = tpu.matmul %10, %9, %cst_10 {dimension_numbers = #tpu.dot_dimension_numbers<[1], [0], [0], [1], [0, 0, 1, 1], [], []>} : vector<16x288xf32>, vector<288x432xf32>, vector<16x432xf32> -> vector<16x432xf32>
    %c0_11 = arith.constant 0 : index
    %c0_12 = arith.constant 0 : index
    %12 = vector.load %arg6[%c0_11, %c0_12] : memref<16x432xf32, #tpu.memory_space<vmem>>, vector<16x432xf32>
    tpu.vector_store %arg6[%c0_11, %c0_12], %11 {strides = array<i32>} : memref<16x432xf32, #tpu.memory_space<vmem>>, vector<16x432xf32>,
    return
  }
  func.func @transform_0(%arg0: i32) -> (i32, i32) {
    %c0_i32 = arith.constant 0 : i32
    %c0_i32_0 = arith.constant 0 : i32
    return %arg0, %c0_i32 : i32, i32
  }
  func.func @transform_1(%arg0: i32) -> (i32, i32) {
    %c0_i32 = arith.constant 0 : i32
    %c0_i32_0 = arith.constant 0 : i32
    %c0_i32_1 = arith.constant 0 : i32
    return %c0_i32, %c0_i32_0 : i32, i32
  }
  func.func @transform_2(%arg0: i32) -> (i32, i32) {
    %c0_i32 = arith.constant 0 : i32
    %c0_i32_0 = arith.constant 0 : i32
    %c0_i32_1 = arith.constant 0 : i32
    return %c0_i32, %c0_i32_0 : i32, i32
  }
  func.func @transform_3(%arg0: i32) -> (i32, i32) {
    %c0_i32 = arith.constant 0 : i32
    %c0_i32_0 = arith.constant 0 : i32
    %c0_i32_1 = arith.constant 0 : i32
    return %c0_i32, %c0_i32_0 : i32, i32
  }
  func.func @transform_4(%arg0: i32) -> (i32, i32) {
    %c0_i32 = arith.constant 0 : i32
    %c0_i32_0 = arith.constant 0 : i32
    %c0_i32_1 = arith.constant 0 : i32
    return %c0_i32, %c0_i32_0 : i32, i32
  }
  func.func @transform_5(%arg0: i32) -> (i32, i32) {
    %c0_i32 = arith.constant 0 : i32
    %c0_i32_0 = arith.constant 0 : i32
    return %arg0, %c0_i32 : i32, i32
  }
}

</mosaic_0001>

<bundles_post_ra>
// kernel: tpu_custom_call.1
= control target key start
LH: loop header
LB: loop body
LE: loop exit
PB: predicated region body
PF: predicated region fallthrough
CT: control target
= control target key end

     0   :  { %10 = vsyncpa [#allocation3], 0  ;;  %s3066_s0 = inlined_call_operand.vmem [shape: f32[576,24], index: 0, kind: input, shape index: {}]   ;;  %s3067_s1 = inlined_call_operand.vmem [shape: f32[24,432], index: 1, kind: input, shape index: {}]   ;;  %s3068_s2 = inlined_call_operand.vmem [shape: s32[288,1], index: 2, kind: input, shape index: {}]   ;;  %s3069_s3 = inlined_call_operand.vmem [shape: s32[1,432], index: 3, kind: input, shape index: {}]   ;;  %s3070_s4 = inlined_call_operand.vmem [shape: f32[16,288], index: 4, kind: input, shape index: {}]   ;;  %s3071_s5 = inlined_call_operand.hbm [shape: f32[32,432], index: 5, kind: output, shape index: {}]  }
   0x1   :  { %12 = vsyncpa [#allocation3 + $0x1], 0  ;;  %s2411_s18 = smov 0   ;;  %s2413_s19 = smov 0  }
   0x2   :  { %s2415_s20 = smov 0   ;;  %s2417_s21 = smov 0  }
   0x3 LB: > { %s2432_s22 = sadd.s32 4294967295, %s2374_s21   ;;  %s1801_s23 = sadd.s32 4294967294, %s2374_s21   ;;  %s2374_s21 = sphi %s2417_s21, %s3077_s21   ;;  %s2370_s20 = sphi %s2415_s20, %s3076_s20   ;;  %s2366_s19 = sphi %s2413_s19, %s3075_s19   ;;  %s2362_s18 = sphi %s2411_s18, %s3074_s18  }
   0x4   : > { %s2436_s24 = sadd.s32 1, %s2374_s21   ;;  %s135_s25 = sadd.s32 1, %s2370_s20 }
   0x5   : > { %s132_s26 = ssub.s32 %s2374_s21, %s2436_s24  ;;  %p145_p0 = scmp.ne.s32.totalorder %s2370_s20, %s2366_s19 }
   0x6   : > { %p133_p1 = scmp.eq.s32.totalorder %s132_s26, 0  ;;  %p146_p2 = scmp.eq.s32.totalorder %s2432_s22, 1 }
   0x7   : > { %p151_p3 = scmp.ne.s32.totalorder %s2366_s19, %s2362_s18  ;;  %p152_p4 = scmp.eq.s32.totalorder %s1801_s23, 1 }
   0x8   : > { %s2447_s27 = scalar_select %p133_p1, %s2370_s20, %s135_s25  }
   0x9   : > { %p2449_p5 = por %p146_p2, %p145_p0  ;;  %p2453_p6 = por %p152_p4, %p151_p3 }
   0xa   : > { %p1804_p7 = scmp.ge.s32.totalorder %s2374_s21, 1  ;;  %p191_p8 = scmp.lt.s32.totalorder %s2374_s21, 3 }
   0xc   : > { %p192_p9 = pnand %p1804_p7, %p191_p8 }
   0xd   : > { %v263_v0 = vld [vmem:[%s3067_s1 + $0x8] sm:$0xff] (!%p192_p9)  ;;  %v265_v2 = vld [vmem:[%s3067_s1 + $0x18] sm:$0xff] (!%p192_p9)  ;;  %s219_s11 = smul.u32 (!%p192_p9), 36, %s2432_s22  ;;  %v262_v5 = vld [vmem:[%s3067_s1] sm:$0xff] (!%p192_p9)  ;;  %v2376_v7 = vmov (!%p192_p9), 0.0   ;;  %v2377_v13 = vmov (!%p192_p9), 0  }
   0xe   : > { %195 = sbr.rel (%p192_p9) target bundleno = 616 (0x268), region = 40  ;;  %v267_v1 = vld [vmem:[%s3067_s1 + $0x28] sm:$0xff] (!%p192_p9)  ;;  %v269_v4 = vld [vmem:[%s3067_s1 + $0x38] sm:$0xff] (!%p192_p9)  ;;  %v266_v6 = vld [vmem:[%s3067_s1 + $0x20] sm:$0xff] (!%p192_p9)  ;;  %447 = vmatprep.mubr.f32.mxu0 (!%p192_p9), %v2376_v7  ;;  %728 = vmatprep.mubr.f32.mxu1 (!%p192_p9), %v2376_v7  ;;  %vm274_vm0 = vcmask (!%p192_p9), 195584   ;;  %s216_s13 = sand.u32 (!%p192_p9), 1, %s2366_s19  }
   0xf   : > { %v2035_v3 = vpack.c.bf16 (!%p192_p9), %v267_v1, %v263_v0  ;;  %v2039_v8 = vpack.c.bf16 (!%p192_p9), %v269_v4, %v265_v2  ;;  %v2037_v9 = vpack.c.bf16 (!%p192_p9), %v266_v6, %v262_v5  ;;  %v264_v10 = vld [vmem:[%s3067_s1 + $0x10] sm:$0xff] (!%p192_p9)  ;;  %v271_v12 = vld [vmem:[%s3067_s1 + $0x48] sm:$0xff] (!%p192_p9)  ;;  %p220_p10 = scmp.lt.s32.totalorder (!%p192_p9), %s219_s11, 71  ;;  %2311 = vset.pattern.permute.xlu1 (!%p192_p9), %v2377_v13  ;;  %2310 = vset.pattern.permute.xlu0 (!%p192_p9), %v2377_v13  ;;  %v273_v15 = vld [vmem:[%s3067_s1 + $0x58] sm:$0xff] (!%p192_p9)  ;;  %s1805_s14 = sshll.u32 (!%p192_p9), %s216_s13, 6 }
  0x10   : > { %v268_v11 = vld [vmem:[%s3067_s1 + $0x30] sm:$0xff] (!%p192_p9)  ;;  %v945_v17 = vld [vmem:[%s3068_s2] sm:$0xff] (!%p192_p9)  ;;  %v948_v21 = vld [vmem:[%s3068_s2 + $0x18] sm:$0xff] (!%p192_p9)  ;;  %s218_s15 = scalar_lea.vmem (!%p192_p9), [#allocation2], %s1805_s14  ;;  %s2378_s30 = smov (!%p192_p9), [#allocation2]  }
  0x11   : > { %2036 = vmatprep.subr.bf16.mxu0 (!%p192_p9), %v2035_v3  ;;  %v2041_v14 = vpack.c.bf16 (!%p192_p9), %v268_v11, %v264_v10  ;;  %2040 = vmatprep.subr.bf16.mxu1 (!%p192_p9), %v2039_v8  ;;  %v947_v16 = vld [vmem:[%s3068_s2 + $0x10] sm:$0xff] (!%p192_p9)  ;;  %v270_v18 = vld [vmem:[%s3067_s1 + $0x40] sm:$0xff] (!%p192_p9)  ;;  %v946_v22 = vld [vmem:[%s3068_s2 + $0x8] sm:$0xff] (!%p192_p9)  ;;  %s1739_s16 = sshll.u32 (!%p192_p9), %s218_s15, 4  ;;  %s2316_s7 = sshll.u32 (!%p192_p9), %s2378_s30, 4  ;;  %s3017_s16 = int_to_ptr.vmem [resolvable:$true] %s1739_s16  ;;  %s2317_s7 = int_to_ptr.vmem [resolvable:$false] %s2316_s7 }
  0x12   : > { %2038 = vmatpush1.bf16.msra.mxu0 (!%p192_p9), %v2037_v9  ;;  %v272_v19 = vld [vmem:[%s3067_s1 + $0x50] sm:$0xff] (!%p192_p9)  ;;  %989 = vperm.xlu1 (!%p192_p9), %2311, %v947_v16   ;;  %v950_v24 = vld [vmem:[%s3068_s2 + $0x28] sm:$0xff] (!%p192_p9)  ;;  %v949_v25 = vld [vmem:[%s3068_s2 + $0x20] sm:$0xff] (!%p192_p9)  ;;  %s2312_s26 = scalar_lea.vmem (!%p192_p9), %s3017_s16, 1024  ;;  %s2318_s8 = scalar_lea.vmem (!%p192_p9), %s2317_s7, 2048 }
  0x13   : > { %2042 = vmatpush1.bf16.msra.mxu1 (!%p192_p9), %v2041_v14  ;;  %387 = vmatprep.subr.mxu0 (!%p192_p9), %v271_v12  ;;  %v952_v27 = vld [vmem:[%s3068_s2 + $0x38] sm:$0xff] (!%p192_p9)  ;;  %v951_v28 = vld [vmem:[%s3068_s2 + $0x30] sm:$0xff] (!%p192_p9)  ;;  %v954_v30 = vld [vmem:[%s3068_s2 + $0x48] sm:$0xff] (!%p192_p9)  ;;  %p2313_p11 = scmp.ne.s32.totalorder (!%p192_p9), %s3017_s16, %s2312_s26  ;;  %p2319_p0 = scmp.lt.s32.totalorder (!%p192_p9), %s3017_s16, %s2317_s7 }
  0x14   : > { %668 = vmatprep.subr.mxu1 (!%p192_p9), %v273_v15  ;;  %983 = vperm.xlu0 (!%p192_p9), %2310, %v945_v17   ;;  %v953_v31 = vld [vmem:[%s3068_s2 + $0x40] sm:$0xff] (!%p192_p9)  ;;  %v956_v33 = vld [vmem:[%s3068_s2 + $0x58] sm:$0xff] (!%p192_p9)  ;;  %v955_v34 = vld [vmem:[%s3068_s2 + $0x50] sm:$0xff] (!%p192_p9)  ;;  %p2320_p1 = scmp.lt.s32.totalorder (!%p192_p9), %s2318_s8, %s2312_s26 }
  0x15   : > { %s3079_s11 = smov (!%p220_p10, %s219_s11), 71  ;;  %v958_v36 = vld [vmem:[%s3068_s2 + $0x68] sm:$0xff]  ;;  %v957_v37 = vld [vmem:[%s3068_s2 + $0x60] sm:$0xff]  ;;  %v960_v39 = vld [vmem:[%s3068_s2 + $0x78] sm:$0xff]  ;;  %p2314_p12 = pnand %p2313_p11, %p2449_p5 }
  0x16   : > { %s1806_s25 = sshll.u32 %s3079_s11, 3  ;;  %388 = vmatpush1.msra.mxu0 %v270_v18  ;;  %992 = vperm.xlu1 %2311, %v948_v21   ;;  %v959_v40 = vld [vmem:[%s3068_s2 + $0x70] sm:$0xff]  ;;  %v962_v42 = vld [vmem:[%s3068_s2 + $0x88] sm:$0xff]  ;;  %v961_v43 = vld [vmem:[%s3068_s2 + $0x80] sm:$0xff]  ;;  %p2321_p2 = por %p2320_p1, %p2319_p0 }
  0x17   : > { %s2507_s6 = scalar_lea.vmem %s3066_s0, %s1806_s25  ;;  %669 = vmatpush1.msra.mxu1 %v272_v19  ;;  %v964_v45 = vld [vmem:[%s3068_s2 + $0x98] sm:$0xff]  ;;  %v963_v46 = vld [vmem:[%s3068_s2 + $0x90] sm:$0xff]  ;;  %v966_v48 = vld [vmem:[%s3068_s2 + $0xa8] sm:$0xff]  ;;  %p2315_p13 = pneg %p2314_p12 }
  0x18   : > { %v226_v20 = vld [vmem:[%s2507_s6] sm:$0xff]  ;;  %v227_v23 = vld [vmem:[%s2507_s6 + $0x8] sm:$0xff]  ;;  %986 = vperm.xlu0 %2310, %v946_v22   ;;  %v228_v26 = vld [vmem:[%s2507_s6 + $0x10] sm:$0xff] }
  0x19   : > { %1807 = vmatmul.mubr.msk.f32.vlgmr.msra.gmra.mrb[0].mxu0 %vm274_vm0, %v226_v20  ;;  %1843 = vmatmul.mubr.msk.f32.vlgmr.msra.gmra.mrb[0].mxu1 %vm274_vm0, %v226_v20  ;;  %v229_v29 = vld [vmem:[%s2507_s6 + $0x18] sm:$0xff]  ;;  %v230_v32 = vld [vmem:[%s2507_s6 + $0x20] sm:$0xff]  ;;  %v231_v35 = vld [vmem:[%s2507_s6 + $0x28] sm:$0xff]  ;;  %p2322_p3 = pnand %p2321_p2, %p2315_p13 }
  0x1a   : > { %453 = vmatprep.mubr.f32.mxu0 %v2376_v7  ;;  %734 = vmatprep.mubr.f32.mxu1 %v2376_v7  ;;  %v232_v38 = vld [vmem:[%s2507_s6 + $0x30] sm:$0xff]  ;;  %v233_v41 = vld [vmem:[%s2507_s6 + $0x38] sm:$0xff]  ;;  %v234_v44 = vld [vmem:[%s2507_s6 + $0x40] sm:$0xff] }
  0x1b   : > { %998 = vperm.xlu1 %2311, %v950_v24   ;;  %v235_v47 = vld [vmem:[%s2507_s6 + $0x48] sm:$0xff]  ;;  %v965_v49 = vld [vmem:[%s3068_s2 + $0xa0] sm:$0xff]  ;;  %v236_v50 = vld [vmem:[%s2507_s6 + $0x50] sm:$0xff] }
  0x1c   : > { %995 = vperm.xlu0 %2310, %v949_v25   ;;  %v968_v51 = vld [vmem:[%s3068_s2 + $0xb8] sm:$0xff]  ;;  %v967_v52 = vld [vmem:[%s3068_s2 + $0xb0] sm:$0xff]  ;;  %v970_v54 = vld [vmem:[%s3068_s2 + $0xc8] sm:$0xff] }
  0x1d   : > { %1808 = vmatmul.mubr.msk.f32.gmra.mrb[2].mxu0 %vm274_vm0, %v227_v23  ;;  %1844 = vmatmul.mubr.msk.f32.gmra.mrb[2].mxu1 %vm274_vm0, %v227_v23  ;;  %v237_v53 = vld [vmem:[%s2507_s6 + $0x58] sm:$0xff]  ;;  %v969_v55 = vld [vmem:[%s3068_s2 + $0xc0] sm:$0xff]  ;;  %v971_v58 = vld [vmem:[%s3068_s2 + $0xd0] sm:$0xff] }
  0x1e   : > { %459 = vmatprep.mubr.f32.mxu0 %v2376_v7  ;;  %740 = vmatprep.mubr.f32.mxu1 %v2376_v7  ;;  %v238_v56 = vld [vmem:[%s2507_s6 + $0x60] sm:$0xff]  ;;  %v972_v57 = vld [vmem:[%s3068_s2 + $0xd8] sm:$0xff]  ;;  %v239_v59 = vld [vmem:[%s2507_s6 + $0x68] sm:$0xff] }
  0x1f   : > { %1004 = vperm.xlu1 %2311, %v952_v27   ;;  %v974_v60 = vld [vmem:[%s3068_s2 + $0xe8] sm:$0xff]  ;;  %v973_v61 = vld [vmem:[%s3068_s2 + $0xe0] sm:$0xff]  ;;  %v240_v62 = vld [vmem:[%s2507_s6 + $0x70] sm:$0xff]  ;;  %v1090_v27 = vlaneseq }
  0x20   : > { %1001 = vperm.xlu0 %2310, %v951_v28   ;;  %v976_v63 = vld [vmem:[%s3068_s2 + $0xf8] sm:$0xff]  ;;  %v975_v0 = vld [vmem:[%s3068_s2 + $0xf0] sm:$0xff]  ;;  %v978_v2 = vld [vmem:[%s3068_s2 + $0x108] sm:$0xff] }
  0x21   : > { %1809 = vmatmul.mubr.msk.f32.gmra.mrb[4].mxu0 %vm274_vm0, %v228_v26  ;;  %1845 = vmatmul.mubr.msk.f32.gmra.mrb[4].mxu1 %vm274_vm0, %v228_v26  ;;  %v241_v1 = vld [vmem:[%s2507_s6 + $0x78] sm:$0xff]  ;;  %v977_v3 = vld [vmem:[%s3068_s2 + $0x100] sm:$0xff]  ;;  %v979_v6 = vld [vmem:[%s3068_s2 + $0x110] sm:$0xff]  ;;  %v1091_v28 = vshrl.u32 %v1090_v27, 7 }
  0x22   : > { %465 = vmatprep.mubr.f32.mxu0 %v2376_v7  ;;  %746 = vmatprep.mubr.f32.mxu1 %v2376_v7  ;;  %v242_v4 = vld [vmem:[%s2507_s6 + $0x80] sm:$0xff]  ;;  %v980_v5 = vld [vmem:[%s3068_s2 + $0x118] sm:$0xff]  ;;  %v243_v8 = vld [vmem:[%s2507_s6 + $0x88] sm:$0xff] }
  0x23   : > { %1010 = vperm.xlu1 %2311, %v954_v30   ;;  %v244_v9 = vld [vmem:[%s2507_s6 + $0x90] sm:$0xff]  ;;  %v245_v10 = vld [vmem:[%s2507_s6 + $0x98] sm:$0xff]  ;;  %v246_v11 = vld [vmem:[%s2507_s6 + $0xa0] sm:$0xff]  ;;  %v1096_v30 = vsub.s32 1, %v1091_v28 }
  0x24   : > { %1007 = vperm.xlu0 %2310, %v953_v31   ;;  %v247_v12 = vld [vmem:[%s2507_s6 + $0xa8] sm:$0xff]  ;;  %v248_v13 = vld [vmem:[%s2507_s6 + $0xb0] sm:$0xff]  ;;  %v249_v14 = vld [vmem:[%s2507_s6 + $0xb8] sm:$0xff] }
  0x25   : > { %1810 = vmatmul.mubr.msk.f32.gmra.mrb[6].mxu0 %vm274_vm0, %v229_v29  ;;  %1846 = vmatmul.mubr.msk.f32.gmra.mrb[6].mxu1 %vm274_vm0, %v229_v29  ;;  %v250_v15 = vld [vmem:[%s2507_s6 + $0xc0] sm:$0xff]  ;;  %v251_v16 = vld [vmem:[%s2507_s6 + $0xc8] sm:$0xff]  ;;  %v252_v17 = vld [vmem:[%s2507_s6 + $0xd0] sm:$0xff] }
  0x26   : > { %471 = vmatprep.mubr.f32.mxu0 %v2376_v7  ;;  %752 = vmatprep.mubr.f32.mxu1 %v2376_v7  ;;  %v253_v18 = vld [vmem:[%s2507_s6 + $0xd8] sm:$0xff]  ;;  %v254_v19 = vld [vmem:[%s2507_s6 + $0xe0] sm:$0xff]  ;;  %v255_v20 = vld [vmem:[%s2507_s6 + $0xe8] sm:$0xff] }
  0x27   : > { %1016 = vperm.xlu1 %2311, %v956_v33   ;;  %v256_v21 = vld [vmem:[%s2507_s6 + $0xf0] sm:$0xff]  ;;  %v257_v22 = vld [vmem:[%s2507_s6 + $0xf8] sm:$0xff]  ;;  %v258_v23 = vld [vmem:[%s2507_s6 + $0x100] sm:$0xff]  ;;  %v1092_v33 = vsub.s32 0, %v1091_v28 }
  0x28   : > { %1013 = vperm.xlu0 %2310, %v955_v34   ;;  %v259_v24 = vld [vmem:[%s2507_s6 + $0x108] sm:$0xff]  ;;  %v260_v25 = vld [vmem:[%s2507_s6 + $0x110] sm:$0xff]  ;;  %v261_v26 = vld [vmem:[%s2507_s6 + $0x118] sm:$0xff]  ;;  %v1100_v34 = vsub.s32 2, %v1091_v28  ;;  %s2034_s6 = sshll.u32 %s2432_s22, 10  ;;  %s3025_s22 = scalar_lea.sflag [#allocation3], %s216_s13 }
  0x29   : > { %1811 = vmatmul.mubr.msk.f32.gmra.mrb[8].mxu0 %vm274_vm0, %v230_v32  ;;  %1847 = vmatmul.mubr.msk.f32.gmra.mrb[8].mxu1 %vm274_vm0, %v230_v32  ;;  %v981_v31 = vld [vmem:[%s3069_s3] sm:$0xf]  ;;  %v1104_v32 = vsub.s32 3, %v1091_v28  ;;  %s3022_s25 = scalar_lea.hbm %s3071_s5, %s2034_s6 }
  0x2a   : > { %477 = vmatprep.mubr.f32.mxu0 %v2376_v7  ;;  %758 = vmatprep.mubr.f32.mxu1 %v2376_v7 }
  0x2b   : > { %1022 = vperm.xlu1 %2311, %v958_v36  }
  0x2c   : > { %1019 = vperm.xlu0 %2310, %v957_v37   ;;  %v2794_v37 = vrot.slane %v981_v31, %v1104_v32 }
  0x2d   : > { %1812 = vmatmul.mubr.msk.f32.gmra.mrb[10].mxu0 %vm274_vm0, %v231_v35  ;;  %1848 = vmatmul.mubr.msk.f32.gmra.mrb[10].mxu1 %vm274_vm0, %v231_v35  ;;  %v2792_v35 = vrot.slane %v981_v31, %v1096_v30 }
  0x2e   : > { %483 = vmatprep.mubr.f32.mxu0 %v2376_v7  ;;  %764 = vmatprep.mubr.f32.mxu1 %v2376_v7 }
  0x2f   : > { %1028 = vperm.xlu1 %2311, %v960_v39   ;;  %v2798_v39 = vrot.slane %v981_v31, %v1100_v34 }
  0x30   : > { %1025 = vperm.xlu0 %2310, %v959_v40  }
  0x31   : > { %1813 = vmatmul.mubr.msk.f32.gmra.mrb[12].mxu0 %vm274_vm0, %v232_v38  ;;  %1849 = vmatmul.mubr.msk.f32.gmra.mrb[12].mxu1 %vm274_vm0, %v232_v38  ;;  %v2796_v38 = vrot.slane %v981_v31, %v1092_v33 }
  0x32   : > { %489 = vmatprep.mubr.f32.mxu0 %v2376_v7  ;;  %770 = vmatprep.mubr.f32.mxu1 %v2376_v7 }
  0x33   : > { %1034 = vperm.xlu1 %2311, %v962_v42  }
  0x34   : > { %1031 = vperm.xlu0 %2310, %v961_v43  }
  0x35   : > { %1814 = vmatmul.mubr.msk.f32.gmra.mrb[14].mxu0 %vm274_vm0, %v233_v41  ;;  %1850 = vmatmul.mubr.msk.f32.gmra.mrb[14].mxu1 %vm274_vm0, %v233_v41 }
  0x36   : > { %495 = vmatprep.mubr.f32.mxu0 %v2376_v7  ;;  %776 = vmatprep.mubr.f32.mxu1 %v2376_v7 }
  0x37   : > { %1040 = vperm.xlu1 %2311, %v964_v45  }
  0x38   : > { %1037 = vperm.xlu0 %2310, %v963_v46  }
  0x39   : > { %1815 = vmatmul.mubr.msk.f32.gmra.mrb[16].mxu0 %vm274_vm0, %v234_v44  ;;  %1851 = vmatmul.mubr.msk.f32.gmra.mrb[16].mxu1 %vm274_vm0, %v234_v44 }
  0x3a   : > { %501 = vmatprep.mubr.f32.mxu0 %v2376_v7  ;;  %782 = vmatprep.mubr.f32.mxu1 %v2376_v7 }
  0x3b   : > { %1046 = vperm.xlu1 %2311, %v966_v48  }
  0x3c   : > { %1043 = vperm.xlu0 %2310, %v965_v49  }
  0x3d   : > { %1816 = vmatmul.mubr.msk.f32.gmra.mrb[18].mxu0 %vm274_vm0, %v235_v47  ;;  %1852 = vmatmul.mubr.msk.f32.gmra.mrb[18].mxu1 %vm274_vm0, %v235_v47 }
  0x3e   : > { %507 = vmatprep.mubr.f32.mxu0 %v2376_v7  ;;  %788 = vmatprep.mubr.f32.mxu1 %v2376_v7 }
  0x3f   : > { %1052 = vperm.xlu1 %2311, %v968_v51  }
  0x40   : > { %1049 = vperm.xlu0 %2310, %v967_v52  }
  0x41   : > { %1817 = vmatmul.mubr.msk.f32.gmra.mrb[20].mxu0 %vm274_vm0, %v236_v50  ;;  %1853 = vmatmul.mubr.msk.f32.gmra.mrb[20].mxu1 %vm274_vm0, %v236_v50 }
  0x42   : > { %513 = vmatprep.mubr.f32.mxu0 %v2376_v7  ;;  %794 = vmatprep.mubr.f32.mxu1 %v2376_v7 }
  0x43   : > { %1058 = vperm.xlu1 %2311, %v970_v54  }
  0x44   : > { %1055 = vperm.xlu0 %2310, %v969_v55  }
  0x45   : > { %1818 = vmatmul.mubr.msk.f32.gmra.mrb[22].mxu0 %vm274_vm0, %v237_v53  ;;  %1854 = vmatmul.mubr.msk.f32.gmra.mrb[22].mxu1 %vm274_vm0, %v237_v53  ;;  %v1395_v53 = vld [vmem:[%s3070_s4 + $0x8] sm:$0xff] }
  0x46   : > { %519 = vmatprep.mubr.f32.mxu0 %v2376_v7  ;;  %800 = vmatprep.mubr.f32.mxu1 %v2376_v7 }
  0x47   : > { %1064 = vperm.xlu1 %2311, %v972_v57  }
  0x48   : > { %1061 = vperm.xlu0 %2310, %v971_v58  }
  0x49   : > { %1819 = vmatmul.mubr.msk.f32.gmra.mrb[24].mxu0 %vm274_vm0, %v238_v56  ;;  %1855 = vmatmul.mubr.msk.f32.gmra.mrb[24].mxu1 %vm274_vm0, %v238_v56 }
  0x4a   : > { %525 = vmatprep.mubr.f32.mxu0 %v2376_v7  ;;  %806 = vmatprep.mubr.f32.mxu1 %v2376_v7 }
  0x4b   : > { %1070 = vperm.xlu1 %2311, %v974_v60  }
  0x4c   : > { %1067 = vperm.xlu0 %2310, %v973_v61  }
  0x4d   : > { %1820 = vmatmul.mubr.msk.f32.gmra.mrb[26].mxu0 %vm274_vm0, %v239_v59  ;;  %1856 = vmatmul.mubr.msk.f32.gmra.mrb[26].mxu1 %vm274_vm0, %v239_v59 }
  0x4e   : > { %531 = vmatprep.mubr.f32.mxu0 %v2376_v7  ;;  %812 = vmatprep.mubr.f32.mxu1 %v2376_v7 }
  0x4f   : > { %1076 = vperm.xlu1 %2311, %v976_v63  }
  0x50   : > { %1073 = vperm.xlu0 %2310, %v975_v0  }
  0x51   : > { %1821 = vmatmul.mubr.msk.f32.gmra.mrb[28].mxu0 %vm274_vm0, %v240_v62  ;;  %1857 = vmatmul.mubr.msk.f32.gmra.mrb[28].mxu1 %vm274_vm0, %v240_v62 }
  0x52   : > { %537 = vmatprep.mubr.f32.mxu0 %v2376_v7  ;;  %818 = vmatprep.mubr.f32.mxu1 %v2376_v7 }
  0x53   : > { %1082 = vperm.xlu1 %2311, %v978_v2  }
  0x54   : > { %1079 = vperm.xlu0 %2310, %v977_v3  }
  0x55   : > { %1822 = vmatmul.mubr.msk.f32.gmra.mrb[30].mxu0 %vm274_vm0, %v241_v1  ;;  %1858 = vmatmul.mubr.msk.f32.gmra.mrb[30].mxu1 %vm274_vm0, %v241_v1 }
  0x56   : > { %543 = vmatprep.mubr.f32.mxu0 %v2376_v7  ;;  %824 = vmatprep.mubr.f32.mxu1 %v2376_v7 }
  0x57   : > { %1088 = vperm.xlu1 %2311, %v980_v5  }
  0x58   : > { %1085 = vperm.xlu0 %2310, %v979_v6  }
  0x59   : > { %1823 = vmatmul.mubr.msk.f32.gmra.mrb[32].mxu0 %vm274_vm0, %v242_v4  ;;  %1859 = vmatmul.mubr.msk.f32.gmra.mrb[32].mxu1 %vm274_vm0, %v242_v4 }
  0x5a   : > { %549 = vmatprep.mubr.f32.mxu0 %v2376_v7  ;;  %830 = vmatprep.mubr.f32.mxu1 %v2376_v7 }
  0x5d   : > { %1824 = vmatmul.mubr.msk.f32.gmra.mrb[34].mxu0 %vm274_vm0, %v243_v8  ;;  %1860 = vmatmul.mubr.msk.f32.gmra.mrb[34].mxu1 %vm274_vm0, %v243_v8 }
  0x5e   : > { %555 = vmatprep.mubr.f32.mxu0 %v2376_v7  ;;  %836 = vmatprep.mubr.f32.mxu1 %v2376_v7 }
  0x61   : > { %1825 = vmatmul.mubr.msk.f32.gmra.mrb[36].mxu0 %vm274_vm0, %v244_v9  ;;  %1861 = vmatmul.mubr.msk.f32.gmra.mrb[36].mxu1 %vm274_vm0, %v244_v9 }
  0x62   : > { %561 = vmatprep.mubr.f32.mxu0 %v2376_v7  ;;  %842 = vmatprep.mubr.f32.mxu1 %v2376_v7 }
  0x65   : > { %1826 = vmatmul.mubr.msk.f32.gmra.mrb[38].mxu0 %vm274_vm0, %v245_v10  ;;  %1862 = vmatmul.mubr.msk.f32.gmra.mrb[38].mxu1 %vm274_vm0, %v245_v10 }
  0x66   : > { %567 = vmatprep.mubr.f32.mxu0 %v2376_v7  ;;  %848 = vmatprep.mubr.f32.mxu1 %v2376_v7 }
  0x69   : > { %1827 = vmatmul.mubr.msk.f32.gmra.mrb[40].mxu0 %vm274_vm0, %v246_v11  ;;  %1863 = vmatmul.mubr.msk.f32.gmra.mrb[40].mxu1 %vm274_vm0, %v246_v11 }
  0x6a   : > { %573 = vmatprep.mubr.f32.mxu0 %v2376_v7  ;;  %854 = vmatprep.mubr.f32.mxu1 %v2376_v7 }
  0x6d   : > { %1828 = vmatmul.mubr.msk.f32.gmra.mrb[42].mxu0 %vm274_vm0, %v247_v12  ;;  %1864 = vmatmul.mubr.msk.f32.gmra.mrb[42].mxu1 %vm274_vm0, %v247_v12 }
  0x6e   : > { %579 = vmatprep.mubr.f32.mxu0 %v2376_v7  ;;  %860 = vmatprep.mubr.f32.mxu1 %v2376_v7 }
  0x71   : > { %1829 = vmatmul.mubr.msk.f32.gmra.mrb[44].mxu0 %vm274_vm0, %v248_v13  ;;  %1865 = vmatmul.mubr.msk.f32.gmra.mrb[44].mxu1 %vm274_vm0, %v248_v13 }
  0x72   : > { %585 = vmatprep.mubr.f32.mxu0 %v2376_v7  ;;  %866 = vmatprep.mubr.f32.mxu1 %v2376_v7 }
  0x75   : > { %1830 = vmatmul.mubr.msk.f32.gmra.mrb[46].mxu0 %vm274_vm0, %v249_v14  ;;  %1866 = vmatmul.mubr.msk.f32.gmra.mrb[46].mxu1 %vm274_vm0, %v249_v14 }
  0x76   : > { %591 = vmatprep.mubr.f32.mxu0 %v2376_v7  ;;  %872 = vmatprep.mubr.f32.mxu1 %v2376_v7 }
  0x79   : > { %1831 = vmatmul.mubr.msk.f32.gmra.mrb[48].mxu0 %vm274_vm0, %v250_v15  ;;  %1867 = vmatmul.mubr.msk.f32.gmra.mrb[48].mxu1 %vm274_vm0, %v250_v15 }
  0x7a   : > { %597 = vmatprep.mubr.f32.mxu0 %v2376_v7  ;;  %878 = vmatprep.mubr.f32.mxu1 %v2376_v7 }
  0x7d   : > { %1832 = vmatmul.mubr.msk.f32.gmra.mrb[50].mxu0 %vm274_vm0, %v251_v16  ;;  %1868 = vmatmul.mubr.msk.f32.gmra.mrb[50].mxu1 %vm274_vm0, %v251_v16 }
  0x7e   : > { %603 = vmatprep.mubr.f32.mxu0 %v2376_v7  ;;  %884 = vmatprep.mubr.f32.mxu1 %v2376_v7 }
  0x81   : > { %1833 = vmatmul.mubr.msk.f32.gmra.mrb[52].mxu0 %vm274_vm0, %v252_v17  ;;  %1869 = vmatmul.mubr.msk.f32.gmra.mrb[52].mxu1 %vm274_vm0, %v252_v17 }
  0x82   : > { %609 = vmatprep.mubr.f32.mxu0 %v2376_v7  ;;  %890 = vmatprep.mubr.f32.mxu1 %v2376_v7 }
  0x85   : > { %1834 = vmatmul.mubr.msk.f32.gmra.mrb[54].mxu0 %vm274_vm0, %v253_v18  ;;  %1870 = vmatmul.mubr.msk.f32.gmra.mrb[54].mxu1 %vm274_vm0, %v253_v18 }
  0x86   : > { %615 = vmatprep.mubr.f32.mxu0 %v2376_v7  ;;  %896 = vmatprep.mubr.f32.mxu1 %v2376_v7 }
  0x89   : > { %1835 = vmatmul.mubr.msk.f32.gmra.mrb[56].mxu0 %vm274_vm0, %v254_v19  ;;  %1871 = vmatmul.mubr.msk.f32.gmra.mrb[56].mxu1 %vm274_vm0, %v254_v19 }
  0x8a   : > { %621 = vmatprep.mubr.f32.mxu0 %v2376_v7  ;;  %902 = vmatprep.mubr.f32.mxu1 %v2376_v7 }
  0x8d   : > { %1836 = vmatmul.mubr.msk.f32.gmra.mrb[58].mxu0 %vm274_vm0, %v255_v20  ;;  %1872 = vmatmul.mubr.msk.f32.gmra.mrb[58].mxu1 %vm274_vm0, %v255_v20 }
  0x8e   : > { %627 = vmatprep.mubr.f32.mxu0 %v2376_v7  ;;  %908 = vmatprep.mubr.f32.mxu1 %v2376_v7 }
  0x91   : > { %1837 = vmatmul.mubr.msk.f32.gmra.mrb[60].mxu0 %vm274_vm0, %v256_v21  ;;  %1873 = vmatmul.mubr.msk.f32.gmra.mrb[60].mxu1 %vm274_vm0, %v256_v21  ;;  %v990_v43 = vpop.permute.xlu1 %989 }
  0x92   : > { %633 = vmatprep.mubr.f32.mxu0 %v2376_v7  ;;  %914 = vmatprep.mubr.f32.mxu1 %v2376_v7  ;;  %vm1115_vm13 = vcmp.eq.s32.totalorder %v990_v43, %v2792_v35  ;;  %vm1117_vm15 = vcmp.eq.s32.totalorder %v990_v43, %v2794_v37 }
  0x93   : > { %v984_v29 = vpop.permute.xlu0 %983 }
  0x94   : > { %vm1107_vm1 = vcmp.eq.s32.totalorder %v984_v29, %v2792_v35  ;;  %vm1109_vm3 = vcmp.eq.s32.totalorder %v984_v29, %v2794_v37  ;;  %vm1106_vm5 = vcmp.eq.s32.totalorder %v984_v29, %v2796_v38  ;;  %vm1108_vm7 = vcmp.eq.s32.totalorder %v984_v29, %v2798_v39 }
  0x95   : > { %1838 = vmatmul.mubr.msk.f32.gmra.mrb[62].mxu0 %vm274_vm0, %v257_v22  ;;  %1874 = vmatmul.mubr.msk.f32.gmra.mrb[62].mxu1 %vm274_vm0, %v257_v22  ;;  %v993_v54 = vpop.permute.xlu1 %992 }
  0x96   : > { %639 = vmatprep.mubr.f32.mxu0 %v2376_v7  ;;  %920 = vmatprep.mubr.f32.mxu1 %v2376_v7  ;;  %vm1119_vm14 = vcmp.eq.s32.totalorder %v993_v54, %v2792_v35 }
  0x97   : > { %v987_v36 = vpop.permute.xlu0 %986 }
  0x98   : > { %vm1111_vm2 = vcmp.eq.s32.totalorder %v987_v36, %v2792_v35  ;;  %vm1113_vm4 = vcmp.eq.s32.totalorder %v987_v36, %v2794_v37  ;;  %vm1110_vm6 = vcmp.eq.s32.totalorder %v987_v36, %v2796_v38  ;;  %vm1112_vm8 = vcmp.eq.s32.totalorder %v987_v36, %v2798_v39 }
  0x99   : > { %1839 = vmatmul.mubr.msk.f32.gmra.mrb[64].mxu0 %vm274_vm0, %v258_v23  ;;  %1875 = vmatmul.mubr.msk.f32.gmra.mrb[64].mxu1 %vm274_vm0, %v258_v23  ;;  %vm2044_vm9 = vmpackc.low %vm1111_vm2, %vm1107_vm1  ;;  %vm1114_vm1 = vcmp.eq.s32.totalorder %v990_v43, %v2796_v38  ;;  %vm1118_vm2 = vcmp.eq.s32.totalorder %v993_v54, %v2796_v38 }
  0x9a   : > { %645 = vmatprep.mubr.f32.mxu0 %v2376_v7  ;;  %926 = vmatprep.mubr.f32.mxu1 %v2376_v7  ;;  %vm2152_vm10 = vmpackc.low %vm1113_vm4, %vm1109_vm3  ;;  %vm1116_vm3 = vcmp.eq.s32.totalorder %v990_v43, %v2798_v39  ;;  %vm1120_vm4 = vcmp.eq.s32.totalorder %v993_v54, %v2798_v39  ;;  %v999_v2 = vpop.permute.xlu1 %998 }
  0x9b   : > { %vm2047_vm11 = vmpackc.low %vm1110_vm6, %vm1106_vm5  ;;  %v996_v4 = vpop.permute.xlu0 %995 }
  0x9c   : > { %vm2155_vm12 = vmpackc.low %vm1112_vm8, %vm1108_vm7 }
  0x9d   : > { %1840 = vmatmul.mubr.msk.f32.gmra.mrb[66].mxu0 %vm274_vm0, %v259_v24  ;;  %1876 = vmatmul.mubr.msk.f32.gmra.mrb[66].mxu1 %vm274_vm0, %v259_v24  ;;  %vm2050_vm5 = vmpackc.low %vm1119_vm14, %vm1115_vm13  ;;  %vm1126_vm13 = vcmp.eq.s32.totalorder %v999_v2, %v2796_v38  ;;  %vm1122_vm14 = vcmp.eq.s32.totalorder %v996_v4, %v2796_v38 }
  0x9e   : > { %651 = vmatprep.mubr.f32.mxu0 %v2376_v7  ;;  %932 = vmatprep.mubr.f32.mxu1 %v2376_v7  ;;  %vm2053_vm7 = vmpackc.low %vm1118_vm2, %vm1114_vm1  ;;  %v1005_v17 = vpop.permute.xlu1 %1004 }
  0x9f   : > { %vm2161_vm8 = vmpackc.low %vm1120_vm4, %vm1116_vm3  ;;  %v1002_v19 = vpop.permute.xlu0 %1001 }
  0xa0   : > { %vm2059_vm3 = vmpackc.low %vm1126_vm13, %vm1122_vm14 }
  0xa1   : > { %1841 = vmatmul.mubr.msk.f32.gmra.mrb[68].mxu0 %vm274_vm0, %v260_v25  ;;  %1877 = vmatmul.mubr.msk.f32.gmra.mrb[68].mxu1 %vm274_vm0, %v260_v25 }
  0xa2   : > { %657 = vmatprep.mubr.f32.mxu0 %v2376_v7  ;;  %938 = vmatprep.mubr.f32.mxu1 %v2376_v7  ;;  %v1011_v31 = vpop.permute.xlu1 %1010 }
  0xa3   : > { %v1008_v33 = vpop.permute.xlu0 %1007 }
  0xa5   : > { %1842 = vmatmul.mubr.msk.f32.gmra.mrb[70].mxu0 %vm274_vm0, %v261_v26  ;;  %1878 = vmatmul.mubr.msk.f32.gmra.mrb[70].mxu1 %vm274_vm0, %v261_v26  ;;  %vm1121_vm0 = vcmp.eq.s32.totalorder %v993_v54, %v2794_v37 }
  0xa6   : > { %1471 = vmatprep.mubr.f32.mxu0 %v1395_v53  ;;  %1625 = vmatprep.mubr.f32.mxu1 %v1395_v53  ;;  %vm2158_vm6 = vmpackc.low %vm1121_vm0, %vm1117_vm15  ;;  %vm1128_vm15 = vcmp.eq.s32.totalorder %v999_v2, %v2798_v39  ;;  %vm1124_vm0 = vcmp.eq.s32.totalorder %v996_v4, %v2798_v39 }
  0xa7   : > { %vm2167_vm4 = vmpackc.low %vm1128_vm15, %vm1124_vm0 }
  0xec   : > { %v449_v40 = vpop.f32.mrb[0].mxu0  ;;  %v730_v41 = vpop.f32.mrb[0].mxu1 }
  0xed   : > { %v451_v42 = vpop.f32.mrb[1].mxu0  ;;  %v732_v44 = vpop.f32.mrb[1].mxu1 }
  0xf0   : > { %v455_v45 = vpop.f32.mrb[2].mxu0  ;;  %v736_v47 = vpop.f32.mrb[2].mxu1 }
  0xf1   : > { %v2046_v46 = vpack.c.bf16 %v455_v45, %v449_v40  ;;  %v457_v48 = vpop.f32.mrb[3].mxu0  ;;  %v2154_v49 = vpack.c.bf16 %v736_v47, %v730_v41  ;;  %v738_v51 = vpop.f32.mrb[3].mxu1 }
  0xf2   : > { %v2043_v50 = vpack.c.bf16 %v457_v48, %v451_v42  ;;  %v2151_v52 = vpack.c.bf16 %v738_v51, %v732_v44  ;;  %v1014_v51 = vpop.permute.xlu0 %1013 }
  0xf4   : > { %v461_v55 = vpop.f32.mrb[4].mxu0  ;;  %2045 = vmatprep.subr.msk.bf16.mxu0 %vm2044_vm9, %v2043_v50  ;;  %v742_v56 = vpop.f32.mrb[4].mxu1  ;;  %2153 = vmatprep.subr.msk.bf16.mxu1 %vm2152_vm10, %v2151_v52  ;;  %vm1123_vm9 = vcmp.eq.s32.totalorder %v996_v4, %v2792_v35  ;;  %vm1127_vm10 = vcmp.eq.s32.totalorder %v999_v2, %v2792_v35 }
  0xf5   : > { %v463_v57 = vpop.f32.mrb[5].mxu0  ;;  %2048 = vmatpush1.bf16.msk.msra.mxu0 %vm2047_vm11, %v2046_v46  ;;  %v744_v58 = vpop.f32.mrb[5].mxu1  ;;  %2156 = vmatpush1.bf16.msk.msra.mxu1 %vm2155_vm12, %v2154_v49  ;;  %vm1125_vm11 = vcmp.eq.s32.totalorder %v996_v4, %v2794_v37  ;;  %vm1129_vm12 = vcmp.eq.s32.totalorder %v999_v2, %v2794_v37  ;;  %vm2056_vm1 = vmpackc.low %vm1127_vm10, %vm1123_vm9  ;;  %vm1134_vm9 = vcmp.eq.s32.totalorder %v1005_v17, %v2796_v38 }
  0xf6   : > { %vm2164_vm2 = vmpackc.low %vm1129_vm12, %vm1125_vm11  ;;  %vm1130_vm10 = vcmp.eq.s32.totalorder %v1002_v19, %v2796_v38  ;;  %vm1136_vm11 = vcmp.eq.s32.totalorder %v1005_v17, %v2798_v39  ;;  %vm1132_vm12 = vcmp.eq.s32.totalorder %v1002_v19, %v2798_v39  ;;  %v1017_v49 = vpop.permute.xlu1 %1016 }
  0xf7   : > { %vm2065_vm15 = vmpackc.low %vm1134_vm9, %vm1130_vm10 }
  0xf8   : > { %v467_v59 = vpop.f32.mrb[6].mxu0  ;;  %v748_v61 = vpop.f32.mrb[6].mxu1  ;;  %vm2173_vm0 = vmpackc.low %vm1136_vm11, %vm1132_vm12 }
  0xf9   : > { %v2052_v60 = vpack.c.bf16 %v467_v59, %v461_v55  ;;  %v469_v62 = vpop.f32.mrb[7].mxu0  ;;  %v2160_v63 = vpack.c.bf16 %v748_v61, %v742_v56  ;;  %v750_v1 = vpop.f32.mrb[7].mxu1 }
  0xfa   : > { %v2049_v0 = vpack.c.bf16 %v469_v62, %v463_v57  ;;  %v2157_v3 = vpack.c.bf16 %v750_v1, %v744_v58  ;;  %v1020_v1 = vpop.permute.xlu0 %1019 }
  0xfc   : > { %2051 = vmatprep.subr.msk.bf16.mxu0 %vm2050_vm5, %v2049_v0  ;;  %v473_v5 = vpop.f32.mrb[8].mxu0  ;;  %2159 = vmatprep.subr.msk.bf16.mxu1 %vm2158_vm6, %v2157_v3  ;;  %v754_v6 = vpop.f32.mrb[8].mxu1  ;;  %vm1131_vm5 = vcmp.eq.s32.totalorder %v1002_v19, %v2792_v35  ;;  %vm1135_vm6 = vcmp.eq.s32.totalorder %v1005_v17, %v2792_v35 }
  0xfd   : > { %2054 = vmatpush1.bf16.msk.msra.mxu0 %vm2053_vm7, %v2052_v60  ;;  %v475_v8 = vpop.f32.mrb[9].mxu0  ;;  %2162 = vmatpush1.bf16.msk.msra.mxu1 %vm2161_vm8, %v2160_v63  ;;  %v756_v9 = vpop.f32.mrb[9].mxu1  ;;  %vm1133_vm7 = vcmp.eq.s32.totalorder %v1002_v19, %v2794_v37  ;;  %vm1137_vm8 = vcmp.eq.s32.totalorder %v1005_v17, %v2794_v37  ;;  %vm2062_vm13 = vmpackc.low %vm1135_vm6, %vm1131_vm5  ;;  %vm1142_vm5 = vcmp.eq.s32.totalorder %v1011_v31, %v2796_v38 }
  0xfe   : > { %vm2170_vm14 = vmpackc.low %vm1137_vm8, %vm1133_vm7  ;;  %vm1138_vm6 = vcmp.eq.s32.totalorder %v1008_v33, %v2796_v38  ;;  %vm1144_vm7 = vcmp.eq.s32.totalorder %v1011_v31, %v2798_v39  ;;  %vm1140_vm8 = vcmp.eq.s32.totalorder %v1008_v33, %v2798_v39  ;;  %v1023_v63 = vpop.permute.xlu1 %1022 }
  0xff   : > { %vm2071_vm11 = vmpackc.low %vm1142_vm5, %vm1138_vm6 }
 0x100   : > { %v479_v10 = vpop.f32.mrb[10].mxu0  ;;  %v760_v12 = vpop.f32.mrb[10].mxu1  ;;  %vm2179_vm12 = vmpackc.low %vm1144_vm7, %vm1140_vm8 }
 0x101   : > { %v2058_v11 = vpack.c.bf16 %v479_v10, %v473_v5  ;;  %v481_v13 = vpop.f32.mrb[11].mxu0  ;;  %v2166_v14 = vpack.c.bf16 %v760_v12, %v754_v6  ;;  %v762_v16 = vpop.f32.mrb[11].mxu1 }
 0x102   : > { %v2055_v15 = vpack.c.bf16 %v481_v13, %v475_v8  ;;  %v2163_v18 = vpack.c.bf16 %v762_v16, %v756_v9  ;;  %v1026_v16 = vpop.permute.xlu0 %1025 }
 0x104   : > { %2057 = vmatprep.subr.msk.bf16.mxu0 %vm2056_vm1, %v2055_v15  ;;  %v485_v20 = vpop.f32.mrb[12].mxu0  ;;  %2165 = vmatprep.subr.msk.bf16.mxu1 %vm2164_vm2, %v2163_v18  ;;  %v766_v21 = vpop.f32.mrb[12].mxu1  ;;  %vm1139_vm1 = vcmp.eq.s32.totalorder %v1008_v33, %v2792_v35  ;;  %vm1143_vm2 = vcmp.eq.s32.totalorder %v1011_v31, %v2792_v35 }
 0x105   : > { %2060 = vmatpush1.bf16.msk.msra.mxu0 %vm2059_vm3, %v2058_v11  ;;  %v487_v22 = vpop.f32.mrb[13].mxu0  ;;  %2168 = vmatpush1.bf16.msk.msra.mxu1 %vm2167_vm4, %v2166_v14  ;;  %v768_v23 = vpop.f32.mrb[13].mxu1  ;;  %vm1141_vm3 = vcmp.eq.s32.totalorder %v1008_v33, %v2794_v37  ;;  %vm1145_vm4 = vcmp.eq.s32.totalorder %v1011_v31, %v2794_v37  ;;  %vm2068_vm9 = vmpackc.low %vm1143_vm2, %vm1139_vm1  ;;  %vm1150_vm1 = vcmp.eq.s32.totalorder %v1017_v49, %v2796_v38 }
 0x106   : > { %vm2176_vm10 = vmpackc.low %vm1145_vm4, %vm1141_vm3  ;;  %vm1146_vm2 = vcmp.eq.s32.totalorder %v1014_v51, %v2796_v38  ;;  %vm1152_vm3 = vcmp.eq.s32.totalorder %v1017_v49, %v2798_v39  ;;  %vm1148_vm4 = vcmp.eq.s32.totalorder %v1014_v51, %v2798_v39  ;;  %v1029_v14 = vpop.permute.xlu1 %1028 }
 0x107   : > { %vm2077_vm7 = vmpackc.low %vm1150_vm1, %vm1146_vm2 }
 0x108   : > { %v491_v24 = vpop.f32.mrb[14].mxu0  ;;  %v772_v26 = vpop.f32.mrb[14].mxu1  ;;  %vm2185_vm8 = vmpackc.low %vm1152_vm3, %vm1148_vm4 }
 0x109   : > { %v2064_v25 = vpack.c.bf16 %v491_v24, %v485_v20  ;;  %v493_v27 = vpop.f32.mrb[15].mxu0  ;;  %v2172_v28 = vpack.c.bf16 %v772_v26, %v766_v21  ;;  %v774_v30 = vpop.f32.mrb[15].mxu1 }
 0x10a   : > { %v2061_v29 = vpack.c.bf16 %v493_v27, %v487_v22  ;;  %v2169_v32 = vpack.c.bf16 %v774_v30, %v768_v23  ;;  %v1032_v30 = vpop.permute.xlu0 %1031 }
 0x10c   : > { %2063 = vmatprep.subr.msk.bf16.mxu0 %vm2062_vm13, %v2061_v29  ;;  %v497_v34 = vpop.f32.mrb[16].mxu0  ;;  %2171 = vmatprep.subr.msk.bf16.mxu1 %vm2170_vm14, %v2169_v32  ;;  %v778_v36 = vpop.f32.mrb[16].mxu1  ;;  %vm1147_vm13 = vcmp.eq.s32.totalorder %v1014_v51, %v2792_v35  ;;  %vm1151_vm14 = vcmp.eq.s32.totalorder %v1017_v49, %v2792_v35 }
 0x10d   : > { %2066 = vmatpush1.bf16.msk.msra.mxu0 %vm2065_vm15, %v2064_v25  ;;  %v499_v40 = vpop.f32.mrb[17].mxu0  ;;  %2174 = vmatpush1.bf16.msk.msra.mxu1 %vm2173_vm0, %v2172_v28  ;;  %v780_v41 = vpop.f32.mrb[17].mxu1  ;;  %vm1149_vm15 = vcmp.eq.s32.totalorder %v1014_v51, %v2794_v37  ;;  %vm1153_vm0 = vcmp.eq.s32.totalorder %v1017_v49, %v2794_v37  ;;  %vm2074_vm5 = vmpackc.low %vm1151_vm14, %vm1147_vm13  ;;  %vm1158_vm13 = vcmp.eq.s32.totalorder %v1023_v63, %v2796_v38 }
 0x10e   : > { %vm2182_vm6 = vmpackc.low %vm1153_vm0, %vm1149_vm15  ;;  %vm1154_vm14 = vcmp.eq.s32.totalorder %v1020_v1, %v2796_v38  ;;  %vm1160_vm15 = vcmp.eq.s32.totalorder %v1023_v63, %v2798_v39  ;;  %vm1156_vm0 = vcmp.eq.s32.totalorder %v1020_v1, %v2798_v39  ;;  %v1035_v28 = vpop.permute.xlu1 %1034  ;;  %v1038_v51 = vpop.permute.xlu0 %1037 }
 0x10f   : > { %vm2083_vm3 = vmpackc.low %vm1158_vm13, %vm1154_vm14 }
 0x110   : > { %v503_v42 = vpop.f32.mrb[18].mxu0  ;;  %v784_v44 = vpop.f32.mrb[18].mxu1  ;;  %vm2191_vm4 = vmpackc.low %vm1160_vm15, %vm1156_vm0 }
 0x111   : > { %v2070_v43 = vpack.c.bf16 %v503_v42, %v497_v34  ;;  %v505_v45 = vpop.f32.mrb[19].mxu0  ;;  %v2178_v46 = vpack.c.bf16 %v784_v44, %v778_v36  ;;  %v786_v48 = vpop.f32.mrb[19].mxu1 }
 0x112   : > { %v2067_v47 = vpack.c.bf16 %v505_v45, %v499_v40  ;;  %v2175_v50 = vpack.c.bf16 %v786_v48, %v780_v41 }
 0x114   : > { %2069 = vmatprep.subr.msk.bf16.mxu0 %vm2068_vm9, %v2067_v47  ;;  %v509_v52 = vpop.f32.mrb[20].mxu0  ;;  %2177 = vmatprep.subr.msk.bf16.mxu1 %vm2176_vm10, %v2175_v50  ;;  %v790_v53 = vpop.f32.mrb[20].mxu1  ;;  %vm1155_vm9 = vcmp.eq.s32.totalorder %v1020_v1, %v2792_v35  ;;  %vm1159_vm10 = vcmp.eq.s32.totalorder %v1023_v63, %v2792_v35 }
 0x115   : > { %2072 = vmatpush1.bf16.msk.msra.mxu0 %vm2071_vm11, %v2070_v43  ;;  %v511_v54 = vpop.f32.mrb[21].mxu0  ;;  %2180 = vmatpush1.bf16.msk.msra.mxu1 %vm2179_vm12, %v2178_v46  ;;  %v792_v55 = vpop.f32.mrb[21].mxu1  ;;  %vm1157_vm11 = vcmp.eq.s32.totalorder %v1020_v1, %v2794_v37  ;;  %vm1161_vm12 = vcmp.eq.s32.totalorder %v1023_v63, %v2794_v37  ;;  %vm2080_vm1 = vmpackc.low %vm1159_vm10, %vm1155_vm9  ;;  %vm1166_vm9 = vcmp.eq.s32.totalorder %v1029_v14, %v2796_v38 }
 0x116   : > { %vm2188_vm2 = vmpackc.low %vm1161_vm12, %vm1157_vm11  ;;  %vm1162_vm10 = vcmp.eq.s32.totalorder %v1026_v16, %v2796_v38  ;;  %vm1168_vm11 = vcmp.eq.s32.totalorder %v1029_v14, %v2798_v39  ;;  %vm1164_vm12 = vcmp.eq.s32.totalorder %v1026_v16, %v2798_v39  ;;  %v1041_v47 = vpop.permute.xlu1 %1040  ;;  %v1044_v1 = vpop.permute.xlu0 %1043 }
 0x117   : > { %vm2089_vm15 = vmpackc.low %vm1166_vm9, %vm1162_vm10 }
 0x118   : > { %v515_v56 = vpop.f32.mrb[22].mxu0  ;;  %v796_v58 = vpop.f32.mrb[22].mxu1  ;;  %vm2197_vm0 = vmpackc.low %vm1168_vm11, %vm1164_vm12 }
 0x119   : > { %v2076_v57 = vpack.c.bf16 %v515_v56, %v509_v52  ;;  %v517_v59 = vpop.f32.mrb[23].mxu0  ;;  %v2184_v60 = vpack.c.bf16 %v796_v58, %v790_v53  ;;  %v798_v62 = vpop.f32.mrb[23].mxu1 }
 0x11a   : > { %v2073_v61 = vpack.c.bf16 %v517_v59, %v511_v54  ;;  %v2181_v0 = vpack.c.bf16 %v798_v62, %v792_v55 }
 0x11c   : > { %2075 = vmatprep.subr.msk.bf16.mxu0 %vm2074_vm5, %v2073_v61  ;;  %v521_v2 = vpop.f32.mrb[24].mxu0  ;;  %2183 = vmatprep.subr.msk.bf16.mxu1 %vm2182_vm6, %v2181_v0  ;;  %v802_v3 = vpop.f32.mrb[24].mxu1  ;;  %vm1163_vm5 = vcmp.eq.s32.totalorder %v1026_v16, %v2792_v35  ;;  %vm1167_vm6 = vcmp.eq.s32.totalorder %v1029_v14, %v2792_v35 }
 0x11d   : > { %2078 = vmatpush1.bf16.msk.msra.mxu0 %vm2077_vm7, %v2076_v57  ;;  %v523_v4 = vpop.f32.mrb[25].mxu0  ;;  %2186 = vmatpush1.bf16.msk.msra.mxu1 %vm2185_vm8, %v2184_v60  ;;  %v804_v5 = vpop.f32.mrb[25].mxu1  ;;  %vm1165_vm7 = vcmp.eq.s32.totalorder %v1026_v16, %v2794_v37  ;;  %vm1169_vm8 = vcmp.eq.s32.totalorder %v1029_v14, %v2794_v37  ;;  %vm2086_vm13 = vmpackc.low %vm1167_vm6, %vm1163_vm5  ;;  %vm1174_vm5 = vcmp.eq.s32.totalorder %v1035_v28, %v2796_v38 }
 0x11e   : > { %vm2194_vm14 = vmpackc.low %vm1169_vm8, %vm1165_vm7  ;;  %vm1170_vm6 = vcmp.eq.s32.totalorder %v1032_v30, %v2796_v38  ;;  %vm1176_vm7 = vcmp.eq.s32.totalorder %v1035_v28, %v2798_v39  ;;  %vm1172_vm8 = vcmp.eq.s32.totalorder %v1032_v30, %v2798_v39  ;;  %v1047_v61 = vpop.permute.xlu1 %1046  ;;  %v1050_v16 = vpop.permute.xlu0 %1049 }
 0x11f   : > { %vm2095_vm11 = vmpackc.low %vm1174_vm5, %vm1170_vm6 }
 0x120   : > { %v527_v6 = vpop.f32.mrb[26].mxu0  ;;  %v808_v9 = vpop.f32.mrb[26].mxu1  ;;  %vm2203_vm12 = vmpackc.low %vm1176_vm7, %vm1172_vm8 }
 0x121   : > { %v2082_v8 = vpack.c.bf16 %v527_v6, %v521_v2  ;;  %v529_v10 = vpop.f32.mrb[27].mxu0  ;;  %v2190_v11 = vpack.c.bf16 %v808_v9, %v802_v3  ;;  %v810_v13 = vpop.f32.mrb[27].mxu1 }
 0x122   : > { %v2079_v12 = vpack.c.bf16 %v529_v10, %v523_v4  ;;  %v2187_v15 = vpack.c.bf16 %v810_v13, %v804_v5 }
 0x124   : > { %2081 = vmatprep.subr.msk.bf16.mxu0 %vm2080_vm1, %v2079_v12  ;;  %v533_v17 = vpop.f32.mrb[28].mxu0  ;;  %2189 = vmatprep.subr.msk.bf16.mxu1 %vm2188_vm2, %v2187_v15  ;;  %v814_v18 = vpop.f32.mrb[28].mxu1  ;;  %vm1171_vm1 = vcmp.eq.s32.totalorder %v1032_v30, %v2792_v35  ;;  %vm1175_vm2 = vcmp.eq.s32.totalorder %v1035_v28, %v2792_v35 }
 0x125   : > { %2084 = vmatpush1.bf16.msk.msra.mxu0 %vm2083_vm3, %v2082_v8  ;;  %v535_v19 = vpop.f32.mrb[29].mxu0  ;;  %2192 = vmatpush1.bf16.msk.msra.mxu1 %vm2191_vm4, %v2190_v11  ;;  %v816_v20 = vpop.f32.mrb[29].mxu1  ;;  %vm1173_vm3 = vcmp.eq.s32.totalorder %v1032_v30, %v2794_v37  ;;  %vm1177_vm4 = vcmp.eq.s32.totalorder %v1035_v28, %v2794_v37  ;;  %vm2092_vm9 = vmpackc.low %vm1175_vm2, %vm1171_vm1  ;;  %vm1182_vm1 = vcmp.eq.s32.totalorder %v1041_v47, %v2796_v38 }
 0x126   : > { %vm2200_vm10 = vmpackc.low %vm1177_vm4, %vm1173_vm3  ;;  %vm1178_vm2 = vcmp.eq.s32.totalorder %v1038_v51, %v2796_v38  ;;  %vm1184_vm3 = vcmp.eq.s32.totalorder %v1041_v47, %v2798_v39  ;;  %vm1180_vm4 = vcmp.eq.s32.totalorder %v1038_v51, %v2798_v39  ;;  %v1053_v12 = vpop.permute.xlu1 %1052  ;;  %v1056_v30 = vpop.permute.xlu0 %1055 }
 0x127   : > { %vm2101_vm7 = vmpackc.low %vm1182_vm1, %vm1178_vm2 }
 0x128   : > { %v539_v21 = vpop.f32.mrb[30].mxu0  ;;  %v820_v23 = vpop.f32.mrb[30].mxu1  ;;  %vm2209_vm8 = vmpackc.low %vm1184_vm3, %vm1180_vm4 }
 0x129   : > { %v2088_v22 = vpack.c.bf16 %v539_v21, %v533_v17  ;;  %v541_v24 = vpop.f32.mrb[31].mxu0  ;;  %v2196_v25 = vpack.c.bf16 %v820_v23, %v814_v18  ;;  %v822_v27 = vpop.f32.mrb[31].mxu1 }
 0x12a   : > { %v2085_v26 = vpack.c.bf16 %v541_v24, %v535_v19  ;;  %v2193_v29 = vpack.c.bf16 %v822_v27, %v816_v20 }
 0x12c   : > { %2087 = vmatprep.subr.msk.bf16.mxu0 %vm2086_vm13, %v2085_v26  ;;  %v545_v31 = vpop.f32.mrb[32].mxu0  ;;  %2195 = vmatprep.subr.msk.bf16.mxu1 %vm2194_vm14, %v2193_v29  ;;  %v826_v32 = vpop.f32.mrb[32].mxu1  ;;  %vm1179_vm13 = vcmp.eq.s32.totalorder %v1038_v51, %v2792_v35  ;;  %vm1183_vm14 = vcmp.eq.s32.totalorder %v1041_v47, %v2792_v35 }
 0x12d   : > { %2090 = vmatpush1.bf16.msk.msra.mxu0 %vm2089_vm15, %v2088_v22  ;;  %v547_v33 = vpop.f32.mrb[33].mxu0  ;;  %2198 = vmatpush1.bf16.msk.msra.mxu1 %vm2197_vm0, %v2196_v25  ;;  %v828_v34 = vpop.f32.mrb[33].mxu1  ;;  %vm1181_vm15 = vcmp.eq.s32.totalorder %v1038_v51, %v2794_v37  ;;  %vm1185_vm0 = vcmp.eq.s32.totalorder %v1041_v47, %v2794_v37  ;;  %vm2098_vm5 = vmpackc.low %vm1183_vm14, %vm1179_vm13  ;;  %vm1190_vm13 = vcmp.eq.s32.totalorder %v1047_v61, %v2796_v38 }
 0x12e   : > { %vm2206_vm6 = vmpackc.low %vm1185_vm0, %vm1181_vm15  ;;  %vm1186_vm14 = vcmp.eq.s32.totalorder %v1044_v1, %v2796_v38  ;;  %vm1192_vm15 = vcmp.eq.s32.totalorder %v1047_v61, %v2798_v39  ;;  %vm1188_vm0 = vcmp.eq.s32.totalorder %v1044_v1, %v2798_v39  ;;  %v1059_v26 = vpop.permute.xlu1 %1058 }
 0x12f   : > { %vm2107_vm3 = vmpackc.low %vm1190_vm13, %vm1186_vm14 }
 0x130   : > { %v551_v36 = vpop.f32.mrb[34].mxu0  ;;  %v832_v41 = vpop.f32.mrb[34].mxu1  ;;  %vm2215_vm4 = vmpackc.low %vm1192_vm15, %vm1188_vm0 }
 0x131   : > { %v2094_v40 = vpack.c.bf16 %v551_v36, %v545_v31  ;;  %v553_v42 = vpop.f32.mrb[35].mxu0  ;;  %v2202_v43 = vpack.c.bf16 %v832_v41, %v826_v32  ;;  %v834_v45 = vpop.f32.mrb[35].mxu1 }
 0x132   : > { %v2091_v44 = vpack.c.bf16 %v553_v42, %v547_v33  ;;  %v2199_v46 = vpack.c.bf16 %v834_v45, %v828_v34 }
 0x134   : > { %2093 = vmatprep.subr.msk.bf16.mxu0 %vm2092_vm9, %v2091_v44  ;;  %v557_v48 = vpop.f32.mrb[36].mxu0  ;;  %2201 = vmatprep.subr.msk.bf16.mxu1 %vm2200_vm10, %v2199_v46  ;;  %v838_v49 = vpop.f32.mrb[36].mxu1  ;;  %vm1187_vm9 = vcmp.eq.s32.totalorder %v1044_v1, %v2792_v35  ;;  %vm1191_vm10 = vcmp.eq.s32.totalorder %v1047_v61, %v2792_v35 }
 0x135   : > { %2096 = vmatpush1.bf16.msk.msra.mxu0 %vm2095_vm11, %v2094_v40  ;;  %v559_v50 = vpop.f32.mrb[37].mxu0  ;;  %2204 = vmatpush1.bf16.msk.msra.mxu1 %vm2203_vm12, %v2202_v43  ;;  %v840_v52 = vpop.f32.mrb[37].mxu1  ;;  %vm1189_vm11 = vcmp.eq.s32.totalorder %v1044_v1, %v2794_v37  ;;  %vm1193_vm12 = vcmp.eq.s32.totalorder %v1047_v61, %v2794_v37  ;;  %vm2104_vm1 = vmpackc.low %vm1191_vm10, %vm1187_vm9  ;;  %vm1198_vm9 = vcmp.eq.s32.totalorder %v1053_v12, %v2796_v38 }
 0x136   : > { %vm2212_vm2 = vmpackc.low %vm1193_vm12, %vm1189_vm11  ;;  %vm1194_vm10 = vcmp.eq.s32.totalorder %v1050_v16, %v2796_v38  ;;  %vm1200_vm11 = vcmp.eq.s32.totalorder %v1053_v12, %v2798_v39  ;;  %vm1196_vm12 = vcmp.eq.s32.totalorder %v1050_v16, %v2798_v39  ;;  %v1065_v44 = vpop.permute.xlu1 %1064 }
 0x137   : > { %vm2113_vm15 = vmpackc.low %vm1198_vm9, %vm1194_vm10 }
 0x138   : > { %v563_v53 = vpop.f32.mrb[38].mxu0  ;;  %v844_v55 = vpop.f32.mrb[38].mxu1  ;;  %vm2221_vm0 = vmpackc.low %vm1200_vm11, %vm1196_vm12 }
 0x139   : > { %v2100_v54 = vpack.c.bf16 %v563_v53, %v557_v48  ;;  %v565_v56 = vpop.f32.mrb[39].mxu0  ;;  %v2208_v57 = vpack.c.bf16 %v844_v55, %v838_v49  ;;  %v846_v59 = vpop.f32.mrb[39].mxu1 }
 0x13a   : > { %v2097_v58 = vpack.c.bf16 %v565_v56, %v559_v50  ;;  %v2205_v60 = vpack.c.bf16 %v846_v59, %v840_v52  ;;  %v1062_v48 = vpop.permute.xlu0 %1061 }
 0x13c   : > { %2099 = vmatprep.subr.msk.bf16.mxu0 %vm2098_vm5, %v2097_v58  ;;  %v569_v62 = vpop.f32.mrb[40].mxu0  ;;  %2207 = vmatprep.subr.msk.bf16.mxu1 %vm2206_vm6, %v2205_v60  ;;  %v850_v63 = vpop.f32.mrb[40].mxu1  ;;  %vm1195_vm5 = vcmp.eq.s32.totalorder %v1050_v16, %v2792_v35  ;;  %vm1199_vm6 = vcmp.eq.s32.totalorder %v1053_v12, %v2792_v35 }
 0x13d   : > { %2102 = vmatpush1.bf16.msk.msra.mxu0 %vm2101_vm7, %v2100_v54  ;;  %v571_v0 = vpop.f32.mrb[41].mxu0  ;;  %2210 = vmatpush1.bf16.msk.msra.mxu1 %vm2209_vm8, %v2208_v57  ;;  %v852_v2 = vpop.f32.mrb[41].mxu1  ;;  %vm1197_vm7 = vcmp.eq.s32.totalorder %v1050_v16, %v2794_v37  ;;  %vm1201_vm8 = vcmp.eq.s32.totalorder %v1053_v12, %v2794_v37  ;;  %vm2110_vm13 = vmpackc.low %vm1199_vm6, %vm1195_vm5  ;;  %vm1206_vm5 = vcmp.eq.s32.totalorder %v1059_v26, %v2796_v38 }
 0x13e   : > { %vm2218_vm14 = vmpackc.low %vm1201_vm8, %vm1197_vm7  ;;  %vm1202_vm6 = vcmp.eq.s32.totalorder %v1056_v30, %v2796_v38  ;;  %vm1208_vm7 = vcmp.eq.s32.totalorder %v1059_v26, %v2798_v39  ;;  %vm1204_vm8 = vcmp.eq.s32.totalorder %v1056_v30, %v2798_v39  ;;  %v1071_v58 = vpop.permute.xlu1 %1070 }
 0x13f   : > { %vm2119_vm11 = vmpackc.low %vm1206_vm5, %vm1202_vm6 }
 0x140   : > { %v575_v3 = vpop.f32.mrb[42].mxu0  ;;  %v856_v5 = vpop.f32.mrb[42].mxu1  ;;  %vm2227_vm12 = vmpackc.low %vm1208_vm7, %vm1204_vm8 }
 0x141   : > { %v2106_v4 = vpack.c.bf16 %v575_v3, %v569_v62  ;;  %v577_v6 = vpop.f32.mrb[43].mxu0  ;;  %v2214_v8 = vpack.c.bf16 %v856_v5, %v850_v63  ;;  %v858_v10 = vpop.f32.mrb[43].mxu1 }
 0x142   : > { %v2103_v9 = vpack.c.bf16 %v577_v6, %v571_v0  ;;  %v2211_v11 = vpack.c.bf16 %v858_v10, %v852_v2  ;;  %v1068_v62 = vpop.permute.xlu0 %1067 }
 0x144   : > { %2105 = vmatprep.subr.msk.bf16.mxu0 %vm2104_vm1, %v2103_v9  ;;  %v581_v13 = vpop.f32.mrb[44].mxu0  ;;  %2213 = vmatprep.subr.msk.bf16.mxu1 %vm2212_vm2, %v2211_v11  ;;  %v862_v14 = vpop.f32.mrb[44].mxu1  ;;  %vm1203_vm1 = vcmp.eq.s32.totalorder %v1056_v30, %v2792_v35  ;;  %vm1207_vm2 = vcmp.eq.s32.totalorder %v1059_v26, %v2792_v35 }
 0x145   : > { %2108 = vmatpush1.bf16.msk.msra.mxu0 %vm2107_vm3, %v2106_v4  ;;  %v583_v15 = vpop.f32.mrb[45].mxu0  ;;  %2216 = vmatpush1.bf16.msk.msra.mxu1 %vm2215_vm4, %v2214_v8  ;;  %v864_v17 = vpop.f32.mrb[45].mxu1  ;;  %vm1205_vm3 = vcmp.eq.s32.totalorder %v1056_v30, %v2794_v37  ;;  %vm1209_vm4 = vcmp.eq.s32.totalorder %v1059_v26, %v2794_v37  ;;  %vm2116_vm9 = vmpackc.low %vm1207_vm2, %vm1203_vm1  ;;  %vm1214_vm1 = vcmp.eq.s32.totalorder %v1065_v44, %v2796_v38  ;;  %v1398_v30 = vld [vmem:[%s3070_s4 + $0x20] sm:$0xff] }
 0x146   : > { %vm2224_vm10 = vmpackc.low %vm1209_vm4, %vm1205_vm3  ;;  %vm1210_vm2 = vcmp.eq.s32.totalorder %v1062_v48, %v2796_v38  ;;  %vm1216_vm3 = vcmp.eq.s32.totalorder %v1065_v44, %v2798_v39  ;;  %vm1212_vm4 = vcmp.eq.s32.totalorder %v1062_v48, %v2798_v39  ;;  %v1077_v9 = vpop.permute.xlu1 %1076 }
 0x147   : > { %vm2125_vm7 = vmpackc.low %vm1214_vm1, %vm1210_vm2 }
 0x148   : > { %v587_v18 = vpop.f32.mrb[46].mxu0  ;;  %v868_v20 = vpop.f32.mrb[46].mxu1  ;;  %vm2233_vm8 = vmpackc.low %vm1216_vm3, %vm1212_vm4 }
 0x149   : > { %v2112_v19 = vpack.c.bf16 %v587_v18, %v581_v13  ;;  %v589_v21 = vpop.f32.mrb[47].mxu0  ;;  %v2220_v22 = vpack.c.bf16 %v868_v20, %v862_v14  ;;  %v870_v24 = vpop.f32.mrb[47].mxu1 }
 0x14a   : > { %v2109_v23 = vpack.c.bf16 %v589_v21, %v583_v15  ;;  %v2217_v25 = vpack.c.bf16 %v870_v24, %v864_v17  ;;  %v1074_v13 = vpop.permute.xlu0 %1073 }
 0x14c   : > { %2111 = vmatprep.subr.msk.bf16.mxu0 %vm2110_vm13, %v2109_v23  ;;  %v593_v27 = vpop.f32.mrb[48].mxu0  ;;  %2219 = vmatprep.subr.msk.bf16.mxu1 %vm2218_vm14, %v2217_v25  ;;  %v874_v28 = vpop.f32.mrb[48].mxu1  ;;  %vm1211_vm13 = vcmp.eq.s32.totalorder %v1062_v48, %v2792_v35  ;;  %vm1215_vm14 = vcmp.eq.s32.totalorder %v1065_v44, %v2792_v35 }
 0x14d   : > { %2114 = vmatpush1.bf16.msk.msra.mxu0 %vm2113_vm15, %v2112_v19  ;;  %v595_v29 = vpop.f32.mrb[49].mxu0  ;;  %2222 = vmatpush1.bf16.msk.msra.mxu1 %vm2221_vm0, %v2220_v22  ;;  %v876_v31 = vpop.f32.mrb[49].mxu1  ;;  %vm1213_vm15 = vcmp.eq.s32.totalorder %v1062_v48, %v2794_v37  ;;  %vm1217_vm0 = vcmp.eq.s32.totalorder %v1065_v44, %v2794_v37  ;;  %vm2122_vm5 = vmpackc.low %vm1215_vm14, %vm1211_vm13  ;;  %vm1222_vm13 = vcmp.eq.s32.totalorder %v1071_v58, %v2796_v38 }
 0x14e   : > { %vm2230_vm6 = vmpackc.low %vm1217_vm0, %vm1213_vm15  ;;  %vm1218_vm14 = vcmp.eq.s32.totalorder %v1068_v62, %v2796_v38  ;;  %vm1224_vm15 = vcmp.eq.s32.totalorder %v1071_v58, %v2798_v39  ;;  %vm1220_vm0 = vcmp.eq.s32.totalorder %v1068_v62, %v2798_v39  ;;  %v1083_v23 = vpop.permute.xlu1 %1082 }
 0x14f   : > { %vm2131_vm3 = vmpackc.low %vm1222_vm13, %vm1218_vm14 }
 0x150   : > { %v599_v32 = vpop.f32.mrb[50].mxu0  ;;  %v880_v34 = vpop.f32.mrb[50].mxu1  ;;  %vm2239_vm4 = vmpackc.low %vm1224_vm15, %vm1220_vm0 }
 0x151   : > { %v2118_v33 = vpack.c.bf16 %v599_v32, %v593_v27  ;;  %v601_v36 = vpop.f32.mrb[51].mxu0  ;;  %v2226_v40 = vpack.c.bf16 %v880_v34, %v874_v28  ;;  %v882_v42 = vpop.f32.mrb[51].mxu1  ;;  %v1394_v27 = vld [vmem:[%s3070_s4] sm:$0xff] }
 0x152   : > { %v2115_v41 = vpack.c.bf16 %v601_v36, %v595_v29  ;;  %v2223_v43 = vpack.c.bf16 %v882_v42, %v876_v31  ;;  %v1080_v28 = vpop.permute.xlu0 %1079  ;;  %v1397_v36 = vld [vmem:[%s3070_s4 + $0x18] sm:$0xff] }
 0x154   : > { %2117 = vmatprep.subr.msk.bf16.mxu0 %vm2116_vm9, %v2115_v41  ;;  %v605_v45 = vpop.f32.mrb[52].mxu0  ;;  %2225 = vmatprep.subr.msk.bf16.mxu1 %vm2224_vm10, %v2223_v43  ;;  %v886_v46 = vpop.f32.mrb[52].mxu1  ;;  %vm1219_vm9 = vcmp.eq.s32.totalorder %v1068_v62, %v2792_v35  ;;  %vm1223_vm10 = vcmp.eq.s32.totalorder %v1071_v58, %v2792_v35 }
 0x155   : > { %2120 = vmatpush1.bf16.msk.msra.mxu0 %vm2119_vm11, %v2118_v33  ;;  %v607_v47 = vpop.f32.mrb[53].mxu0  ;;  %2228 = vmatpush1.bf16.msk.msra.mxu1 %vm2227_vm12, %v2226_v40  ;;  %v888_v49 = vpop.f32.mrb[53].mxu1  ;;  %vm1221_vm11 = vcmp.eq.s32.totalorder %v1068_v62, %v2794_v37  ;;  %vm1225_vm12 = vcmp.eq.s32.totalorder %v1071_v58, %v2794_v37  ;;  %vm2128_vm1 = vmpackc.low %vm1223_vm10, %vm1219_vm9  ;;  %vm1230_vm9 = vcmp.eq.s32.totalorder %v1077_v9, %v2796_v38 }
 0x156   : > { %vm2236_vm2 = vmpackc.low %vm1225_vm12, %vm1221_vm11  ;;  %vm1226_vm10 = vcmp.eq.s32.totalorder %v1074_v13, %v2796_v38  ;;  %vm1232_vm11 = vcmp.eq.s32.totalorder %v1077_v9, %v2798_v39  ;;  %vm1228_vm12 = vcmp.eq.s32.totalorder %v1074_v13, %v2798_v39  ;;  %v1089_v43 = vpop.permute.xlu1 %1088 }
 0x157   : > { %vm2137_vm15 = vmpackc.low %vm1230_vm9, %vm1226_vm10 }
 0x158   : > { %v611_v50 = vpop.f32.mrb[54].mxu0  ;;  %v892_v52 = vpop.f32.mrb[54].mxu1  ;;  %vm2245_vm0 = vmpackc.low %vm1232_vm11, %vm1228_vm12 }
 0x159   : > { %v2124_v51 = vpack.c.bf16 %v611_v50, %v605_v45  ;;  %v613_v53 = vpop.f32.mrb[55].mxu0  ;;  %v2232_v54 = vpack.c.bf16 %v892_v52, %v886_v46  ;;  %v894_v56 = vpop.f32.mrb[55].mxu1 }
 0x15a   : > { %v2121_v55 = vpack.c.bf16 %v613_v53, %v607_v47  ;;  %v2229_v57 = vpack.c.bf16 %v894_v56, %v888_v49  ;;  %v1086_v45 = vpop.permute.xlu0 %1085 }
 0x15c   : > { %2123 = vmatprep.subr.msk.bf16.mxu0 %vm2122_vm5, %v2121_v55  ;;  %v617_v59 = vpop.f32.mrb[56].mxu0  ;;  %2231 = vmatprep.subr.msk.bf16.mxu1 %vm2230_vm6, %v2229_v57  ;;  %v898_v60 = vpop.f32.mrb[56].mxu1  ;;  %vm1227_vm5 = vcmp.eq.s32.totalorder %v1074_v13, %v2792_v35  ;;  %vm1231_vm6 = vcmp.eq.s32.totalorder %v1077_v9, %v2792_v35 }
 0x15d   : > { %2126 = vmatpush1.bf16.msk.msra.mxu0 %vm2125_vm7, %v2124_v51  ;;  %v619_v61 = vpop.f32.mrb[57].mxu0  ;;  %2234 = vmatpush1.bf16.msk.msra.mxu1 %vm2233_vm8, %v2232_v54  ;;  %v900_v63 = vpop.f32.mrb[57].mxu1  ;;  %vm1229_vm7 = vcmp.eq.s32.totalorder %v1074_v13, %v2794_v37  ;;  %vm1233_vm8 = vcmp.eq.s32.totalorder %v1077_v9, %v2794_v37  ;;  %vm2134_vm13 = vmpackc.low %vm1231_vm6, %vm1227_vm5  ;;  %vm1238_vm5 = vcmp.eq.s32.totalorder %v1083_v23, %v2796_v38 }
 0x15e   : > { %vm2242_vm14 = vmpackc.low %vm1233_vm8, %vm1229_vm7  ;;  %vm1234_vm6 = vcmp.eq.s32.totalorder %v1080_v28, %v2796_v38  ;;  %vm1240_vm7 = vcmp.eq.s32.totalorder %v1083_v23, %v2798_v39  ;;  %vm1236_vm8 = vcmp.eq.s32.totalorder %v1080_v28, %v2798_v39 }
 0x15f   : > { %vm2143_vm11 = vmpackc.low %vm1238_vm5, %vm1234_vm6 }
 0x160   : > { %v623_v0 = vpop.f32.mrb[58].mxu0  ;;  %v904_v2 = vpop.f32.mrb[58].mxu1  ;;  %vm2251_vm12 = vmpackc.low %vm1240_vm7, %vm1236_vm8 }
 0x161   : > { %v2130_v1 = vpack.c.bf16 %v623_v0, %v617_v59  ;;  %v625_v3 = vpop.f32.mrb[59].mxu0  ;;  %v2238_v4 = vpack.c.bf16 %v904_v2, %v898_v60  ;;  %v906_v6 = vpop.f32.mrb[59].mxu1 }
 0x162   : > { %v2127_v5 = vpack.c.bf16 %v625_v3, %v619_v61  ;;  %v2235_v8 = vpack.c.bf16 %v906_v6, %v900_v63 }
 0x164   : > { %2129 = vmatprep.subr.msk.bf16.mxu0 %vm2128_vm1, %v2127_v5  ;;  %v629_v10 = vpop.f32.mrb[60].mxu0  ;;  %2237 = vmatprep.subr.msk.bf16.mxu1 %vm2236_vm2, %v2235_v8  ;;  %v910_v11 = vpop.f32.mrb[60].mxu1  ;;  %vm1235_vm1 = vcmp.eq.s32.totalorder %v1080_v28, %v2792_v35  ;;  %vm1239_vm2 = vcmp.eq.s32.totalorder %v1083_v23, %v2792_v35 }
 0x165   : > { %2132 = vmatpush1.bf16.msk.msra.mxu0 %vm2131_vm3, %v2130_v1  ;;  %v631_v12 = vpop.f32.mrb[61].mxu0  ;;  %2240 = vmatpush1.bf16.msk.msra.mxu1 %vm2239_vm4, %v2238_v4  ;;  %v912_v14 = vpop.f32.mrb[61].mxu1  ;;  %vm1237_vm3 = vcmp.eq.s32.totalorder %v1080_v28, %v2794_v37  ;;  %vm1241_vm4 = vcmp.eq.s32.totalorder %v1083_v23, %v2794_v37  ;;  %vm2140_vm9 = vmpackc.low %vm1239_vm2, %vm1235_vm1  ;;  %vm1249_vm1 = vcmp.eq.s32.totalorder %v1089_v43, %v2794_v37 }
 0x166   : > { %vm2248_vm10 = vmpackc.low %vm1241_vm4, %vm1237_vm3  ;;  %vm1245_vm2 = vcmp.eq.s32.totalorder %v1086_v45, %v2794_v37  ;;  %vm1248_vm3 = vcmp.eq.s32.totalorder %v1089_v43, %v2798_v39  ;;  %vm1244_vm4 = vcmp.eq.s32.totalorder %v1086_v45, %v2798_v39  ;;  %v1396_v37 = vld [vmem:[%s3070_s4 + $0x10] sm:$0xff] }
 0x167   : > { %vm2254_vm7 = vmpackc.low %vm1249_vm1, %vm1245_vm2 }
 0x168   : > { %v635_v15 = vpop.f32.mrb[62].mxu0  ;;  %v916_v17 = vpop.f32.mrb[62].mxu1  ;;  %vm2257_vm8 = vmpackc.low %vm1248_vm3, %vm1244_vm4 }
 0x169   : > { %v2136_v16 = vpack.c.bf16 %v635_v15, %v629_v10  ;;  %v637_v18 = vpop.f32.mrb[63].mxu0  ;;  %v2244_v19 = vpack.c.bf16 %v916_v17, %v910_v11  ;;  %v918_v21 = vpop.f32.mrb[63].mxu1 }
 0x16a   : > { %v2133_v20 = vpack.c.bf16 %v637_v18, %v631_v12  ;;  %v2241_v22 = vpack.c.bf16 %v918_v21, %v912_v14 }
 0x16c   : > { %2135 = vmatprep.subr.msk.bf16.mxu0 %vm2134_vm13, %v2133_v20  ;;  %v641_v24 = vpop.f32.mrb[64].mxu0  ;;  %2243 = vmatprep.subr.msk.bf16.mxu1 %vm2242_vm14, %v2241_v22  ;;  %v922_v25 = vpop.f32.mrb[64].mxu1  ;;  %vm1246_vm13 = vcmp.eq.s32.totalorder %v1089_v43, %v2796_v38  ;;  %vm1242_vm14 = vcmp.eq.s32.totalorder %v1086_v45, %v2796_v38 }
 0x16d   : > { %2138 = vmatpush1.bf16.msk.msra.mxu0 %vm2137_vm15, %v2136_v16  ;;  %v643_v26 = vpop.f32.mrb[65].mxu0  ;;  %2246 = vmatpush1.bf16.msk.msra.mxu1 %vm2245_vm0, %v2244_v19  ;;  %v924_v29 = vpop.f32.mrb[65].mxu1  ;;  %vm1247_vm15 = vcmp.eq.s32.totalorder %v1089_v43, %v2792_v35  ;;  %vm1243_vm0 = vcmp.eq.s32.totalorder %v1086_v45, %v2792_v35  ;;  %vm2149_vm5 = vmpackc.low %vm1246_vm13, %vm1242_vm14  ;;  %v1399_v35 = vld [vmem:[%s3070_s4 + $0x28] sm:$0xff] }
 0x16e   : > { %vm2146_vm6 = vmpackc.low %vm1247_vm15, %vm1243_vm0 }
 0x170   : > { %v647_v31 = vpop.f32.mrb[66].mxu0  ;;  %1472 = vmatmul.mubr.f32.vlgmr.msra.gmra.mrb[72].mxu0 %v1394_v27  ;;  %v928_v33 = vpop.f32.mrb[66].mxu1  ;;  %1626 = vmatmul.mubr.f32.vlgmr.msra.gmra.mrb[72].mxu1 %v1394_v27 }
 0x171   : > { %v2142_v32 = vpack.c.bf16 %v647_v31, %v641_v24  ;;  %v649_v34 = vpop.f32.mrb[67].mxu0  ;;  %1477 = vmatprep.mubr.f32.mxu0 %v1398_v30  ;;  %v2250_v40 = vpack.c.bf16 %v928_v33, %v922_v25  ;;  %v930_v42 = vpop.f32.mrb[67].mxu1  ;;  %1631 = vmatprep.mubr.f32.mxu1 %v1398_v30 }
 0x172   : > { %v2139_v41 = vpack.c.bf16 %v649_v34, %v643_v26  ;;  %v2247_v44 = vpack.c.bf16 %v930_v42, %v924_v29 }
 0x174   : > { %2141 = vmatprep.subr.msk.bf16.mxu0 %vm2140_vm9, %v2139_v41  ;;  %v653_v46 = vpop.f32.mrb[68].mxu0  ;;  %1478 = vmatmul.mubr.f32.gmra.mrb[74].mxu0 %v1397_v36  ;;  %v934_v47 = vpop.f32.mrb[68].mxu1  ;;  %vm1400_vm9 = vcmask 261120  }
 0x175   : > { %2249 = vmatprep.subr.msk.bf16.mxu1 %vm2248_vm10, %v2247_v44  ;;  %2144 = vmatpush1.bf16.msk.msra.mxu0 %vm2143_vm11, %v2142_v32  ;;  %v655_v48 = vpop.f32.mrb[69].mxu0  ;;  %v936_v49 = vpop.f32.mrb[69].mxu1  ;;  %vm1718_vm10 = vcmask 392192  }
 0x176   : > { %2252 = vmatpush1.bf16.msk.msra.mxu1 %vm2251_vm12, %v2250_v40  ;;  %1548 = vmatprep.mubr.f32.mxu0 %v2376_v7 }
 0x177   : > { %1632 = vmatmul.mubr.f32.gmra.mrb[74].mxu1 %v1397_v36 }
 0x178   : > { %v659_v50 = vpop.f32.mrb[70].mxu0  ;;  %1702 = vmatprep.mubr.f32.mxu1 %v2376_v7  ;;  %v940_v52 = vpop.f32.mrb[70].mxu1 }
 0x179   : > { %v2148_v51 = vpack.c.bf16 %v659_v50, %v653_v46  ;;  %v661_v53 = vpop.f32.mrb[71].mxu0  ;;  %v2256_v38 = vpack.c.bf16 %v940_v52, %v934_v47  ;;  %v942_v55 = vpop.f32.mrb[71].mxu1 }
 0x17a   : > { %v2145_v54 = vpack.c.bf16 %v661_v53, %v655_v48  ;;  %v2253_v56 = vpack.c.bf16 %v942_v55, %v936_v49 }
 0x17c   : > { %2147 = vmatprep.subr.msk.bf16.mxu0 %vm2146_vm6, %v2145_v54  ;;  %2255 = vmatprep.subr.msk.bf16.mxu1 %vm2254_vm7, %v2253_v56 }
 0x17d   : > { %2150 = vmatpush1.bf16.msk.msra.mxu0 %vm2149_vm5, %v2148_v51  ;;  %2258 = vmatpush1.bf16.msk.msra.mxu1 %vm2257_vm8, %v2256_v38 }
 0x180   : > { %1951 = vmatmul.mubr.msk.f32.vlgmr.msra.gmra.mrb[72].mxu0 %vm1400_vm9, %v1396_v37  ;;  %2025 = vmatmul.mubr.msk.f32.vlgmr.msra.gmra.mrb[72].mxu1 %vm1400_vm9, %v1396_v37 }
 0x181   : > { %1554 = vmatprep.mubr.f32.mxu0 %v2376_v7  ;;  %1708 = vmatprep.mubr.f32.mxu1 %v2376_v7 }
 0x184   : > { %1952 = vmatmul.mubr.msk.f32.gmra.mrb[74].mxu0 %vm1400_vm9, %v1399_v35  ;;  %2026 = vmatmul.mubr.msk.f32.gmra.mrb[74].mxu1 %vm1400_vm9, %v1399_v35 }
 0x253   : > { %v1550_v39 = vpop.f32.mrb[72].mxu0  ;;  %v1704_v57 = vpop.f32.mrb[72].mxu1 }
 0x254   : > { %1715 = vst [vmem:[%s218_s15] sm:$0xff] %v1550_v39  ;;  %v1552_v58 = vpop.f32.mrb[73].mxu0  ;;  %1717 = vst [vmem:[%s218_s15 + $0x10] sm:$0xff] %v1704_v57  ;;  %v1706_v59 = vpop.f32.mrb[73].mxu1 }
 0x255   : > { %1716 = vst [vmem:[%s218_s15 + $0x8] sm:$0xff] %v1552_v58  ;;  %1719 = vst.msk [vmem:[%s218_s15 + $0x18] sm:$0xff] %vm1718_vm10, %v1706_v59 }
 0x257   : > { %v1556_v7 = vpop.f32.mrb[74].mxu0  ;;  %v1710_v60 = vpop.f32.mrb[74].mxu1 }
 0x258   : > { %1720 = vst [vmem:[%s218_s15 + $0x20] sm:$0xff] %v1556_v7  ;;  %v1558_v61 = vpop.f32.mrb[75].mxu0  ;;  %1722 = vst [vmem:[%s218_s15 + $0x30] sm:$0xff] %v1710_v60  ;;  %v1712_v62 = vpop.f32.mrb[75].mxu1 }
 0x259   : > { %1721 = vst [vmem:[%s218_s15 + $0x28] sm:$0xff] %v1558_v61  ;;  %1723 = vst.msk [vmem:[%s218_s15 + $0x38] sm:$0xff] %vm1718_vm10, %v1712_v62 }
 0x25a   : > { %2325 = shalt.err (!%p2322_p3)
}
 0x25b   : > { %s2326_s11 = scalar_lea.hbm %s3022_s25, 1024  ;;  %s2330_s12 = scalar_lea.hbm %s3071_s5, 2048 }
 0x25c   : > { %p2327_p4 = scmp.ne.s32.totalorder %s3022_s25, %s2326_s11  ;;  %p2331_p9 = scmp.lt.u32.totalorder %s3022_s25, %s3071_s5 }
 0x25d   : > { %p2332_p10 = scmp.lt.u32.totalorder %s2330_s12, %s2326_s11  ;;  %p2334_p12 = scmp.lt.u32.totalorder %s2326_s11, %s3022_s25 }
 0x25e   : > { %p2328_p7 = pnand %p2327_p4, %p2449_p5 }
 0x25f   : > { %p2333_p11 = por %p2332_p10, %p2331_p9 }
 0x260   : > { %p2329_p8 = pneg %p2328_p7 }
 0x261   : > { %p2335_p13 = por %p2334_p12, %p2333_p11 }
 0x263   : > { %p2336_p0 = pnand %p2335_p13, %p2329_p8 }
 0x265   : > { %2339 = shalt.err (!%p2336_p0)
}
 0x266   : > { %s2379_s15 = smov 512   ;;  %s2380_s6 = smov 32  }
 0x267   : > { %2267 = dma.vmem_to_hbm [thread:$0]  (%p2449_p5), %s3017_s16, 1024, %s3022_s25, %s3025_s22, %s2379_s15, %s2379_s15, %s2380_s6  }
 0x268 PF: > { %p2273_p1 = scmp.ge.s32.totalorder %s2374_s21, 2  ;;  %s1754_s17 = sand.u32 1, %s2362_s18  }
 0x269   : > { %s1755_s23 = scalar_lea.sflag [#allocation3], %s1754_s17 }
 0x26a   : > { %p2270_p2 = pnand %p2273_p1, %p2453_p6 }
 0x26c   : > { %2357 = dma.done.wait (!%p2270_p2), %s1755_s23, 1024  }
 0x26d   : > { %2359 = vsyncadd (!%p2270_p2), %s1755_s23, 4294966272  ;;  %p15_p3 = scmp.ge.s32.totalorder %s2436_s24, 4   ;;  %s3074_s18 = smov %s2366_s19 }
 0x26e   : > { %s3075_s19 = smov %s2370_s20  ;;  %s3076_s20 = smov %s2447_s27 }
 0x26f   : > { %s3077_s21 = smov %s2436_s24  ;;  %17 = sbr.rel (!%p15_p3) target bundleno = 3 (0x3), region = 75 }
 0x276   :  { %1760 = vsyncpa [#allocation3], 1 }
 0x277   :  { %1762 = vsyncpa [#allocation3 + $0x1], 1 }

</bundles_post_ra>
